<compile_context>
chip_gen: v7x
topology: tpu7x:2x2x1
jax: 0.10.0
libtpu: 0.0.40
codegen_flags: <defaults>
</compile_context>

<pallas_src>
import jax
import jax.numpy as jnp
from jax.experimental import pallas as pl
from jax.experimental.pallas import tpu as pltpu


def _discriminator_kernel(x_ref,
                          wqkv_ref, bqkv_ref,
                          wo_ref, bo_ref,
                          w1_ref, b1_ref,
                          w2_ref, b2_ref,
                          o_ref):
    # x_ref: (L, Bb, E) slab of the seq-first (L, N, E) input.
    L, Bb, E = x_ref.shape

    # Batch-leading layout (single small sublane transpose of the input tile).
    x = jnp.transpose(x_ref[...].astype(jnp.float32), (1, 0, 2))   # (Bb, L, E)
    x2 = x.reshape(Bb * L, E)

    # --- fused QKV projection: one (Bb*L, E) @ (E, 3E) matmul ---
    # (1/sqrt(E) is folded into the Q columns of wqkv/bqkv at prep time.)
    qkv = jnp.dot(x2, wqkv_ref[...], preferred_element_type=jnp.float32) + bqkv_ref[...]
    qkv = qkv.reshape(Bb, L, 3 * E)
    q = qkv[:, :, :E]
    k = qkv[:, :, E:2 * E]
    v = qkv[:, :, 2 * E:]

    # --- single-head attention for all Bb batch rows at once ---
    s = jnp.einsum('bqd,bkd->bqk', q, k, preferred_element_type=jnp.float32)  # (Bb, L, L)
    s = s - jnp.max(s, axis=-1, keepdims=True)
    p = jnp.exp(s)
    p = p * pl.reciprocal(jnp.sum(p, axis=-1, keepdims=True))   # exact reciprocal

    attn = jnp.einsum('bqk,bkd->bqd', p, v, preferred_element_type=jnp.float32)  # (Bb, L, E)
    attn = attn.reshape(Bb * L, E)
    attn = jnp.dot(attn, wo_ref[...], preferred_element_type=jnp.float32) + bo_ref[...]

    # --- LayerNorm over last dim (eps = 1e-5, biased variance, like PyTorch).
    # The affine (gamma, beta) is pre-folded into w1/b1, so only normalize here.
    mu = jnp.mean(attn, axis=-1, keepdims=True)
    var = jnp.mean((attn - mu) ** 2, axis=-1, keepdims=True)
    h = (attn - mu) * jax.lax.rsqrt(var + 1e-5)                  # (Bb*L, E)

    # --- fc: Linear(E,512) -> ReLU -> Linear(512,1) -> Sigmoid ---
    h1 = jnp.dot(h, w1_ref[...], preferred_element_type=jnp.float32) + b1_ref[...]
    h1 = jnp.maximum(h1, 0.0)                                    # (Bb*L, H)

    # 512 -> 1 as a VPU multiply + lane reduction (avoid output-width-1 MXU matmul).
    hw = h1 * w2_ref[...]                                        # (Bb*L, H)
    z = jnp.sum(hw.reshape(Bb, L, -1), axis=-1) + b2_ref[...]    # (Bb, L)
    o_ref[...] = pl.reciprocal(1.0 + jnp.exp(-z))                # sigmoid, lane-dense store


def discriminator_forward(x_lne, params, block_b=8):
    """x_lne: (L, N, E) float32 (PyTorch seq-first layout). Returns (L, N, 1)."""
    L, N, E = x_lne.shape
    H = params["w1"].shape[1]
    assert params["w1"].shape == (E, H) and params["w2"].shape == (H, 1)

    # ---- static parameter prep (runs once under jit; all-weight, no activations) ----
    # Pack QKV weights; fold the 1/sqrt(E) attention scale into the Q projection.
    scale = 1.0 / (float(E) ** 0.5)
    wqkv = jnp.concatenate([params["wq"] * scale, params["wk"], params["wv"]], axis=1)  # (E, 3E)
    bqkv = jnp.concatenate([params["bq"] * scale, params["bk"], params["bv"]], axis=1)  # (1, 3E)
    # Fold LayerNorm affine into the first fc layer: (h*g + b) @ w1 = h @ (g.T*w1) + b@w1.
    w1_f = params["gamma"].reshape(E, 1) * params["w1"]            # (E, H)
    b1_f = params["b1"] + params["beta"] @ params["w1"]            # (1, H)
    w2_row = params["w2"].reshape(1, H)   # (H,1) -> (1,H) row for the VPU reduction

    # Batch block size: whole batch if small, else the largest multiple-of-8 divisor.
    if N <= block_b:
        bb = N
    else:
        cands = [d for d in range(8, block_b + 1, 8) if N % d == 0]
        bb = max(cands) if cands else N
    grid = (N // bb,)

    def full(shape):
        return pl.BlockSpec(shape, lambda b: (0,) * len(shape))

    out_nl = pl.pallas_call(
        _discriminator_kernel,
        out_shape=jax.ShapeDtypeStruct((N, L), jnp.float32),
        grid_spec=pltpu.PrefetchScalarGridSpec(
            num_scalar_prefetch=0,
            grid=grid,
            in_specs=[
                pl.BlockSpec((L, bb, E), lambda b: (0, b, 0)),   # x: native seq-first layout
                full((E, 3 * E)), full((1, 3 * E)),              # wqkv, bqkv
                full((E, E)), full((1, E)),                      # wo, bo
                full((E, H)), full((1, H)),                      # w1 (gamma-folded), b1
                full((1, H)), full((1, 1)),                      # w2 (row), b2
            ],
            out_specs=pl.BlockSpec((bb, L), lambda b: (b, 0)),   # lane-dense (no size-1 lane)
        ),
        compiler_params=pltpu.CompilerParams(dimension_semantics=("parallel",)),
    )(
        x_lne,
        wqkv, bqkv,
        params["wo"], params["bo"],
        w1_f, b1_f,
        w2_row, params["b2"],
    )
    # Only the tiny (N, L) result gets transposed back to PyTorch's (L, N, 1).
    return jnp.transpose(out_nl)[..., None]


def make_params(key, E, H=512):
    """Deterministic synthetic parameters. All weights stored as (in, out) so the
    kernel computes x @ W (equivalent to PyTorch's x @ W_pt.T)."""
    ks = jax.random.split(key, 8)
    s_e = 1.0 / (E ** 0.5)
    s_h = 1.0 / (H ** 0.5)
    return {
        "wq": jax.random.normal(ks[0], (E, E), jnp.float32) * s_e,
        "wk": jax.random.normal(ks[1], (E, E), jnp.float32) * s_e,
        "wv": jax.random.normal(ks[2], (E, E), jnp.float32) * s_e,
        "bq": jnp.zeros((1, E), jnp.float32),
        "bk": jnp.zeros((1, E), jnp.float32),
        "bv": jnp.zeros((1, E), jnp.float32),
        "wo": jax.random.normal(ks[3], (E, E), jnp.float32) * s_e,
        "bo": jax.random.normal(ks[4], (1, E), jnp.float32) * 0.01,
        "gamma": jnp.ones((1, E), jnp.float32),
        "beta": jnp.zeros((1, E), jnp.float32),
        "w1": jax.random.normal(ks[5], (E, H), jnp.float32) * s_e,
        "b1": jax.random.normal(ks[6], (1, H), jnp.float32) * 0.01,
        "w2": jax.random.normal(ks[7], (H, 1), jnp.float32) * s_h,
        "b2": jnp.zeros((1, 1), jnp.float32),
    }


def reference_forward(x_lne, p):
    """Pure-JAX reference matching PyTorch Discriminator.forward semantics."""
    x = jnp.transpose(x_lne, (1, 0, 2))  # (N, L, E)
    E = x.shape[-1]
    scale = 1.0 / (E ** 0.5)
    q = x @ p["wq"] + p["bq"]
    k = x @ p["wk"] + p["bk"]
    v = x @ p["wv"] + p["bv"]
    s = jnp.einsum("nld,nmd->nlm", q * scale, k)
    a = jax.nn.softmax(s, axis=-1)
    attn = jnp.einsum("nlm,nmd->nld", a, v) @ p["wo"] + p["bo"]
    mu = jnp.mean(attn, axis=-1, keepdims=True)
    var = jnp.mean((attn - mu) ** 2, axis=-1, keepdims=True)
    h = (attn - mu) / jnp.sqrt(var + 1e-5) * p["gamma"] + p["beta"]
    h1 = jnp.maximum(h @ p["w1"] + p["b1"], 0.0)
    z = h1 @ p["w2"] + p["b2"]
    out = jax.nn.sigmoid(z)                # (N, L, 1)
    return jnp.transpose(out, (1, 0, 2))   # (L, N, 1)


if __name__ == "__main__":
    L, N, E = 8, 16, 32   # seq_len, batch, input_dim (small test shapes)
    key = jax.random.PRNGKey(0)
    kx, kp = jax.random.split(key)
    x = jax.random.normal(kx, (L, N, E), jnp.float32)   # PyTorch seq-first (L, N, E)
    params = make_params(kp, E)

    out = jax.block_until_ready(discriminator_forward(x, params))   # grid=(2,), Bb=8
    ref = jax.block_until_ready(reference_forward(x, params))

    assert out.shape == (L, N, 1), out.shape
    assert jnp.max(jnp.abs(out - ref)) < 1e-5, float(jnp.max(jnp.abs(out - ref)))

    print("KERNEL_OK")
</pallas_src>

<mosaic_0001>
module attributes {stable_mosaic.version = 11 : i64} {
  func.func @_discriminator_kernel(%arg0: i32, %arg1: memref<8x8x32xf32, #tpu.memory_space<vmem>>, %arg2: memref<32x96xf32, #tpu.memory_space<vmem>>, %arg3: memref<1x96xf32, #tpu.memory_space<vmem>>, %arg4: memref<32x32xf32, #tpu.memory_space<vmem>>, %arg5: memref<1x32xf32, #tpu.memory_space<vmem>>, %arg6: memref<32x512xf32, #tpu.memory_space<vmem>>, %arg7: memref<1x512xf32, #tpu.memory_space<vmem>>, %arg8: memref<1x512xf32, #tpu.memory_space<vmem>>, %arg9: memref<1x1xf32, #tpu.memory_space<vmem>>, %arg10: memref<8x8xf32, #tpu.memory_space<vmem>>) attributes {dimension_semantics = [#tpu.dimension_semantics<parallel>], iteration_bounds = array<i64: 2>, scalar_prefetch = 0 : i64, scratch_operands = 0 : i64, tpu.core_type = #tpu.core_type<tc>, window_params = [{transform_indices = @transform_0, window_bounds = array<i64: 8, 8, 32>}, {pipeline_mode = #tpu.pipeline_mode<synchronous>, transform_indices = @transform_1, window_bounds = array<i64: 32, 96>}, {pipeline_mode = #tpu.pipeline_mode<synchronous>, transform_indices = @transform_2, window_bounds = array<i64: 1, 96>}, {pipeline_mode = #tpu.pipeline_mode<synchronous>, transform_indices = @transform_3, window_bounds = array<i64: 32, 32>}, {pipeline_mode = #tpu.pipeline_mode<synchronous>, transform_indices = @transform_4, window_bounds = array<i64: 1, 32>}, {pipeline_mode = #tpu.pipeline_mode<synchronous>, transform_indices = @transform_5, window_bounds = array<i64: 32, 512>}, {pipeline_mode = #tpu.pipeline_mode<synchronous>, transform_indices = @transform_6, window_bounds = array<i64: 1, 512>}, {pipeline_mode = #tpu.pipeline_mode<synchronous>, transform_indices = @transform_7, window_bounds = array<i64: 1, 512>}, {pipeline_mode = #tpu.pipeline_mode<synchronous>, transform_indices = @transform_8, window_bounds = array<i64: 1, 1>}, {transform_indices = @transform_9, window_bounds = array<i64: 8, 8>}]} {
    %c0 = arith.constant 0 : index
    %c0_0 = arith.constant 0 : index
    %c0_1 = arith.constant 0 : index
    %0 = vector.load %arg1[%c0, %c0_0, %c0_1] : memref<8x8x32xf32, #tpu.memory_space<vmem>>, vector<8x8x32xf32>
    %1 = tpu.transpose %0, [1, 0, 2] : vector<8x8x32xf32> -> vector<8x8x32xf32>
    %2 = vector.shape_cast %1 : vector<8x8x32xf32> to vector<64x32xf32>
    %c0_2 = arith.constant 0 : index
    %c0_3 = arith.constant 0 : index
    %3 = vector.load %arg2[%c0_2, %c0_3] : memref<32x96xf32, #tpu.memory_space<vmem>>, vector<32x96xf32>
    %cst = arith.constant dense<0.000000e+00> : vector<64x96xf32>
    %4 = tpu.matmul %2, %3, %cst {dimension_numbers = #tpu.dot_dimension_numbers<[1], [0], [0], [1], [0, 0, 1, 1], [], []>} : vector<64x32xf32>, vector<32x96xf32>, vector<64x96xf32> -> vector<64x96xf32>
    %c0_4 = arith.constant 0 : index
    %c0_5 = arith.constant 0 : index
    %5 = vector.load %arg3[%c0_4, %c0_5] : memref<1x96xf32, #tpu.memory_space<vmem>>, vector<1x96xf32>
    %6 = vector.broadcast %5 : vector<1x96xf32> to vector<64x96xf32>
    %7 = arith.addf %4, %6 : vector<64x96xf32>
    %8 = vector.shape_cast %7 : vector<64x96xf32> to vector<8x8x96xf32>
    %9 = vector.extract_strided_slice %8 {offsets = [0, 0, 0], sizes = [8, 8, 32], strides = [1, 1, 1]} : vector<8x8x96xf32> to vector<8x8x32xf32>
    %10 = vector.extract_strided_slice %8 {offsets = [0, 0, 32], sizes = [8, 8, 32], strides = [1, 1, 1]} : vector<8x8x96xf32> to vector<8x8x32xf32>
    %11 = vector.extract_strided_slice %8 {offsets = [0, 0, 64], sizes = [8, 8, 32], strides = [1, 1, 1]} : vector<8x8x96xf32> to vector<8x8x32xf32>
    "tpu.trace_start"() <{level = 10 : i32, message = "bqd,bkd->bqk"}> : () -> ()
    %cst_6 = arith.constant dense<0.000000e+00> : vector<8x8x8xf32>
    %12 = tpu.matmul %9, %10, %cst_6 {dimension_numbers = #tpu.dot_dimension_numbers<[2], [2], [1], [1], [0, 0, 0, 1, 1, 1], [0], [0]>} : vector<8x8x32xf32>, vector<8x8x32xf32>, vector<8x8x8xf32> -> vector<8x8x8xf32>
    "tpu.trace_stop"() : () -> ()
    %cst_7 = arith.constant dense<0xFF800000> : vector<8x8xf32>
    %13 = vector.multi_reduction <maximumf>, %12, %cst_7 [2] : vector<8x8x8xf32> to vector<8x8xf32>
    %14 = vector.shape_cast %13 : vector<8x8xf32> to vector<8x8x1xf32>
    %15 = vector.broadcast %14 : vector<8x8x1xf32> to vector<8x8x8xf32>
    %16 = arith.subf %12, %15 : vector<8x8x8xf32>
    %17 = math.exp %16 : vector<8x8x8xf32>
    %cst_8 = arith.constant dense<0.000000e+00> : vector<8x8xf32>
    %18 = vector.multi_reduction <add>, %17, %cst_8 [2] : vector<8x8x8xf32> to vector<8x8xf32>
    %19 = vector.shape_cast %18 : vector<8x8xf32> to vector<8x8x1xf32>
    %20 = tpu.reciprocal %19 : vector<8x8x1xf32> -> vector<8x8x1xf32>
    %21 = vector.broadcast %20 : vector<8x8x1xf32> to vector<8x8x8xf32>
    %22 = arith.mulf %17, %21 : vector<8x8x8xf32>
    "tpu.trace_start"() <{level = 10 : i32, message = "bqk,bkd->bqd"}> : () -> ()
    %cst_9 = arith.constant dense<0.000000e+00> : vector<8x8x32xf32>
    %23 = tpu.matmul %22, %11, %cst_9 {dimension_numbers = #tpu.dot_dimension_numbers<[2], [1], [1], [2], [0, 0, 0, 1, 1, 2], [0], [0]>} : vector<8x8x8xf32>, vector<8x8x32xf32>, vector<8x8x32xf32> -> vector<8x8x32xf32>
    "tpu.trace_stop"() : () -> ()
    %24 = vector.shape_cast %23 : vector<8x8x32xf32> to vector<64x32xf32>
    %c0_10 = arith.constant 0 : index
    %c0_11 = arith.constant 0 : index
    %25 = vector.load %arg4[%c0_10, %c0_11] : memref<32x32xf32, #tpu.memory_space<vmem>>, vector<32x32xf32>
    %cst_12 = arith.constant dense<0.000000e+00> : vector<64x32xf32>
    %26 = tpu.matmul %24, %25, %cst_12 {dimension_numbers = #tpu.dot_dimension_numbers<[1], [0], [0], [1], [0, 0, 1, 1], [], []>} : vector<64x32xf32>, vector<32x32xf32>, vector<64x32xf32> -> vector<64x32xf32>
    %c0_13 = arith.constant 0 : index
    %c0_14 = arith.constant 0 : index
    %27 = vector.load %arg5[%c0_13, %c0_14] : memref<1x32xf32, #tpu.memory_space<vmem>>, vector<1x32xf32>
    %28 = vector.broadcast %27 : vector<1x32xf32> to vector<64x32xf32>
    %29 = arith.addf %26, %28 : vector<64x32xf32>
    %cst_15 = arith.constant dense<0.000000e+00> : vector<64xf32>
    %30 = vector.multi_reduction <add>, %29, %cst_15 [1] : vector<64x32xf32> to vector<64xf32>
    %31 = vector.shape_cast %30 : vector<64xf32> to vector<64x1xf32>
    %cst_16 = arith.constant 3.200000e+01 : f32
    %32 = vector.broadcast %cst_16 : f32 to vector<64x1xf32>
    %33 = arith.divf %31, %32 : vector<64x1xf32>
    %34 = vector.broadcast %33 : vector<64x1xf32> to vector<64x32xf32>
    %35 = arith.subf %29, %34 : vector<64x32xf32>
    %36 = arith.mulf %35, %35 : vector<64x32xf32>
    %cst_17 = arith.constant dense<0.000000e+00> : vector<64xf32>
    %37 = vector.multi_reduction <add>, %36, %cst_17 [1] : vector<64x32xf32> to vector<64xf32>
    %38 = vector.shape_cast %37 : vector<64xf32> to vector<64x1xf32>
    %cst_18 = arith.constant 3.200000e+01 : f32
    %39 = vector.broadcast %cst_18 : f32 to vector<64x1xf32>
    %40 = arith.divf %38, %39 : vector<64x1xf32>
    %41 = vector.broadcast %33 : vector<64x1xf32> to vector<64x32xf32>
    %42 = arith.subf %29, %41 : vector<64x32xf32>
    %cst_19 = arith.constant 9.99999974E-6 : f32
    %43 = vector.broadcast %cst_19 : f32 to vector<64x1xf32>
    %44 = arith.addf %40, %43 : vector<64x1xf32>
    %45 = math.rsqrt %44 : vector<64x1xf32>
    %46 = vector.broadcast %45 : vector<64x1xf32> to vector<64x32xf32>
    %47 = arith.mulf %42, %46 : vector<64x32xf32>
    %c0_20 = arith.constant 0 : index
    %c0_21 = arith.constant 0 : index
    %48 = vector.load %arg6[%c0_20, %c0_21] : memref<32x512xf32, #tpu.memory_space<vmem>>, vector<32x512xf32>
    %cst_22 = arith.constant dense<0.000000e+00> : vector<64x512xf32>
    %49 = tpu.matmul %47, %48, %cst_22 {dimension_numbers = #tpu.dot_dimension_numbers<[1], [0], [0], [1], [0, 0, 1, 1], [], []>} : vector<64x32xf32>, vector<32x512xf32>, vector<64x512xf32> -> vector<64x512xf32>
    %c0_23 = arith.constant 0 : index
    %c0_24 = arith.constant 0 : index
    %50 = vector.load %arg7[%c0_23, %c0_24] : memref<1x512xf32, #tpu.memory_space<vmem>>, vector<1x512xf32>
    %51 = vector.broadcast %50 : vector<1x512xf32> to vector<64x512xf32>
    %52 = arith.addf %49, %51 : vector<64x512xf32>
    %cst_25 = arith.constant 0.000000e+00 : f32
    %53 = vector.broadcast %cst_25 : f32 to vector<64x512xf32>
    %54 = arith.maximumf %52, %53 : vector<64x512xf32>
    %c0_26 = arith.constant 0 : index
    %c0_27 = arith.constant 0 : index
    %55 = vector.load %arg8[%c0_26, %c0_27] : memref<1x512xf32, #tpu.memory_space<vmem>>, vector<1x512xf32>
    %56 = vector.broadcast %55 : vector<1x512xf32> to vector<64x512xf32>
    %57 = arith.mulf %54, %56 : vector<64x512xf32>
    %58 = vector.shape_cast %57 : vector<64x512xf32> to vector<8x8x512xf32>
    %cst_28 = arith.constant dense<0.000000e+00> : vector<8x8xf32>
    %59 = vector.multi_reduction <add>, %58, %cst_28 [2] : vector<8x8x512xf32> to vector<8x8xf32>
    %c0_29 = arith.constant 0 : index
    %c0_30 = arith.constant 0 : index
    %60 = vector.load %arg9[%c0_29, %c0_30] : memref<1x1xf32, #tpu.memory_space<vmem>>, vector<1x1xf32>
    %61 = vector.broadcast %60 : vector<1x1xf32> to vector<8x8xf32>
    %62 = arith.addf %59, %61 : vector<8x8xf32>
    %cst_31 = arith.constant 0.000000e+00 : f32
    %63 = vector.broadcast %cst_31 : f32 to vector<8x8xf32>
    %64 = arith.subf %63, %62 : vector<8x8xf32>
    %65 = math.exp %64 : vector<8x8xf32>
    %cst_32 = arith.constant 1.000000e+00 : f32
    %66 = vector.broadcast %cst_32 : f32 to vector<8x8xf32>
    %67 = arith.addf %66, %65 : vector<8x8xf32>
    %68 = tpu.reciprocal %67 : vector<8x8xf32> -> vector<8x8xf32>
    %c0_33 = arith.constant 0 : index
    %c0_34 = arith.constant 0 : index
    %69 = vector.load %arg10[%c0_33, %c0_34] : memref<8x8xf32, #tpu.memory_space<vmem>>, vector<8x8xf32>
    tpu.vector_store %arg10[%c0_33, %c0_34], %68 {strides = array<i32>} : memref<8x8xf32, #tpu.memory_space<vmem>>, vector<8x8xf32>,
    return
  }
  func.func @transform_0(%arg0: i32) -> (i32, i32, i32) {
    %c0_i32 = arith.constant 0 : i32
    %c0_i32_0 = arith.constant 0 : i32
    %c0_i32_1 = arith.constant 0 : i32
    return %c0_i32, %arg0, %c0_i32_0 : i32, i32, i32
  }
  func.func @transform_1(%arg0: i32) -> (i32, i32) {
    %c0_i32 = arith.constant 0 : i32
    %c0_i32_0 = arith.constant 0 : i32
    %c0_i32_1 = arith.constant 0 : i32
    return %c0_i32, %c0_i32_0 : i32, i32
  }
  func.func @transform_2(%arg0: i32) -> (i32, i32) {
    %c0_i32 = arith.constant 0 : i32
    %c0_i32_0 = arith.constant 0 : i32
    %c0_i32_1 = arith.constant 0 : i32
    return %c0_i32, %c0_i32_0 : i32, i32
  }
  func.func @transform_3(%arg0: i32) -> (i32, i32) {
    %c0_i32 = arith.constant 0 : i32
    %c0_i32_0 = arith.constant 0 : i32
    %c0_i32_1 = arith.constant 0 : i32
    return %c0_i32, %c0_i32_0 : i32, i32
  }
  func.func @transform_4(%arg0: i32) -> (i32, i32) {
    %c0_i32 = arith.constant 0 : i32
    %c0_i32_0 = arith.constant 0 : i32
    %c0_i32_1 = arith.constant 0 : i32
    return %c0_i32, %c0_i32_0 : i32, i32
  }
  func.func @transform_5(%arg0: i32) -> (i32, i32) {
    %c0_i32 = arith.constant 0 : i32
    %c0_i32_0 = arith.constant 0 : i32
    %c0_i32_1 = arith.constant 0 : i32
    return %c0_i32, %c0_i32_0 : i32, i32
  }
  func.func @transform_6(%arg0: i32) -> (i32, i32) {
    %c0_i32 = arith.constant 0 : i32
    %c0_i32_0 = arith.constant 0 : i32
    %c0_i32_1 = arith.constant 0 : i32
    return %c0_i32, %c0_i32_0 : i32, i32
  }
  func.func @transform_7(%arg0: i32) -> (i32, i32) {
    %c0_i32 = arith.constant 0 : i32
    %c0_i32_0 = arith.constant 0 : i32
    %c0_i32_1 = arith.constant 0 : i32
    return %c0_i32, %c0_i32_0 : i32, i32
  }
  func.func @transform_8(%arg0: i32) -> (i32, i32) {
    %c0_i32 = arith.constant 0 : i32
    %c0_i32_0 = arith.constant 0 : i32
    %c0_i32_1 = arith.constant 0 : i32
    return %c0_i32, %c0_i32_0 : i32, i32
  }
  func.func @transform_9(%arg0: i32) -> (i32, i32) {
    %c0_i32 = arith.constant 0 : i32
    %c0_i32_0 = arith.constant 0 : i32
    return %arg0, %c0_i32 : i32, i32
  }
}

</mosaic_0001>

<bundles_post_ra>
// kernel: tpu_custom_call.1
= control target key start
LH: loop header
LB: loop body
LE: loop exit
PB: predicated region body
PF: predicated region fallthrough
CT: control target
= control target key end

     0   :  { %s4132_s0 = inlined_call_operand.hbm [shape: f32[8,16,32], index: 0, kind: input, shape index: {}]   ;;  %s4133_s1 = inlined_call_operand.hbm [shape: f32[32,96], index: 1, kind: input, shape index: {}]   ;;  %s4134_s2 = inlined_call_operand.vmem [shape: f32[1,96], index: 2, kind: input, shape index: {}]   ;;  %s4135_s3 = inlined_call_operand.hbm [shape: f32[32,32], index: 3, kind: input, shape index: {}]   ;;  %s4136_s4 = inlined_call_operand.vmem [shape: f32[1,32], index: 4, kind: input, shape index: {}]   ;;  %s4137_s5 = inlined_call_operand.hbm [shape: f32[32,512], index: 5, kind: input, shape index: {}]   ;;  %s4138_s6 = inlined_call_operand.vmem [shape: f32[1,512], index: 6, kind: input, shape index: {}]   ;;  %s4139_s7 = inlined_call_operand.vmem [shape: f32[1,512], index: 7, kind: input, shape index: {}]   ;;  %s4140_s8 = inlined_call_operand.<no memory space> [shape: f32[1,1], index: 8, kind: input, shape index: {}]   ;;  %s4141_s9 = inlined_call_operand.vmem [shape: f32[16,8], index: 9, kind: output, shape index: {}]  }
   0x1   :  { %4148 = sst [smem:[#allocation15_spill]] %s4138_s6  ;;  %v14_v0 = vstv %s4140_s8 }
   0x2   :  { %4149 = sst [smem:[#allocation16_spill]] %s4139_s7  ;;  %15 = vst [vmem:[#allocation2] sm:$0x1] %v14_v0 }
   0x3   :  { %4150 = sst [smem:[#allocation17_spill]] %s4141_s9 }
   0x4   :  { %16 = vsyncpa [#allocation4], 0 }
   0x5   :  { %18 = vsyncpa [#allocation4 + $0x1], 0 }
   0x6   :  { %19 = vsyncpa [#allocation6], 0 }
   0x7   :  { %20 = vsyncpa [#allocation9], 0  ;;  %s3549_s11 = smov 0   ;;  %s3551_s12 = smov 0  }
   0x8   :  { %s3553_s13 = smov 0   ;;  %s3555_s14 = smov 0  }
   0x9 LB: > { %s3568_s8 = sadd.s32 4294967295, %s3478_s14   ;;  %s3571_s15 = sadd.s32 1, %s3478_s14   ;;  %s3478_s14 = sphi %s3555_s14, %s4168_s14   ;;  %s3474_s13 = sphi %s3553_s13, %s4172_s13   ;;  %s3470_s12 = sphi %s3551_s12, %s4171_s12   ;;  %s3466_s11 = sphi %s3549_s11, %s4170_s11  }
   0xa   : > { %4151 = sst [smem:[#allocation13_spill]] %s3571_s15  ;;  %s30_s16 = ssub.s32 %s3478_s14, %s3571_s15 }
   0xb   : > { %s33_s17 = sadd.s32 1, %s3474_s13  ;;  %p31_p0 = scmp.eq.s32.totalorder %s30_s16, 0 }
   0xc   : > { %p40_p1 = scmp.ne.s32.totalorder %s3474_s13, %s3470_s12  ;;  %p41_p2 = scmp.eq.s32.totalorder %s3478_s14, 0 }
   0xd   : > { %p46_p3 = scmp.ne.s32.totalorder %s3470_s12, %s3466_s11  ;;  %p4142_p5 = scmp.eq.s32.totalorder %s3568_s8, 0 }
   0xe   : > { %s3581_s18 = scalar_select %p31_p0, %s3474_s13, %s33_s17  }
   0xf   : > { %p42_p4 = por %p41_p2, %p40_p1  ;;  %p2864_p6 = scmp.ge.s32.totalorder %s3478_s14, 1 }
  0x10   : > { %4152 = sst [smem:[#allocation14_spill]] %s3581_s18  ;;  %p251_p7 = scmp.lt.s32.totalorder %s3478_s14, 3 }
  0x11   : > { %p3588_p8 = por %p4142_p5, %p46_p3  ;;  %s3480_s21 = smov [#allocation5]  }
  0x12   : > { %p3592_p9 = pnand %p2864_p6, %p251_p7  ;;  %s263_s22 = sshll.u32 %s3480_s21, 4  ;;  %s264_s22 = int_to_ptr.vmem [resolvable:$true] %s263_s22 }
  0x13   : > { %s4153_s19 = scalar_select %p3588_p8, 1, 0 }
  0x14   : > { %s4154_s20 = scalar_select %p3592_p9, 1, 0 }
  0x15   : > { %p3160_p10 = pneg %p3592_p9  ;;  %p3177_p12 = scmp.lt.s32.totalorder %s3478_s14, 2 }
  0x16   : > { %s3322_s27 = scalar_lea.hbm %s4133_s1, 512 }
  0x17   : > { %p3600_p11 = pnand %p3160_p10, %p4142_p5  ;;  %p3605_p13 = pnand %p3177_p12, %p42_p4 }
  0x18   : > { %p3323_p0 = scmp.ne.s32.totalorder %s4133_s1, %s3322_s27  ;;  %p3329_p4 = scmp.lt.u32.totalorder %s3322_s27, %s4133_s1 }
  0x19   : > { %s4156_s24 = scalar_select %p3605_p13, 1, 0 }
  0x1a   : > { %p3617_p1 = pneg %p3600_p11 }
  0x1c   : > { %p3325_p2 = pnand %p3617_p1, %p3323_p0 }
  0x1e   : > { %p3326_p3 = pneg %p3325_p2 }
  0x20   : > { %p3331_p6 = pnand %p3329_p4, %p3326_p3 }
  0x22   : > { %3334 = shalt.err (!%p3331_p6)
}
  0x23   : > { %s3335_s16 = scalar_lea.vmem %s264_s22, 512  ;;  %p3343_p5 = scmp.lt.s32.totalorder %s264_s22, %s264_s22 }
  0x24   : > { %p3336_p7 = scmp.ne.s32.totalorder %s264_s22, %s3335_s16  ;;  %p3344_p8 = scmp.lt.s32.totalorder %s3335_s16, %s3335_s16 }
  0x26   : > { %p3338_p10 = pnand %p3336_p7, %p3617_p1  ;;  %p3345_p9 = por %p3344_p8, %p3343_p5 }
  0x28   : > { %p3339_p12 = pneg %p3338_p10 }
  0x2a   : > { %p3346_p13 = pnand %p3345_p9, %p3339_p12 }
  0x2c   : > { %3349 = shalt.err (!%p3346_p13)
}
  0x2d   : > { %s3481_s17 = smov 128   ;;  %s3482_s21 = smov 8  }
  0x2e   : > { %3163 = dma.hbm_to_vmem [thread:$0]  (!%p3600_p11), %s4133_s1, 512, %s264_s22, [#allocation6], %s3481_s17, %s3481_s17, %s3482_s21  }
  0x2f   : > { %s3483_s27 = smov [#allocation7]   ;;  %s3484_s29 = smov [#allocation8]  }
  0x30   : > { %s279_s28 = sshll.u32 %s3483_s27, 4  ;;  %s295_s10 = sshll.u32 %s3484_s29, 4  ;;  %s280_s28 = int_to_ptr.vmem [resolvable:$true] %s279_s28  ;;  %s296_s10 = int_to_ptr.vmem [resolvable:$true] %s295_s10 }
  0x31   : > { %s3350_s18 = scalar_lea.hbm %s4135_s3, 512 }
  0x32   : > { %p3351_p5 = scmp.ne.s32.totalorder %s4135_s3, %s3350_s18  ;;  %p3357_p13 = scmp.lt.u32.totalorder %s3350_s18, %s4135_s3 }
  0x34   : > { %p3353_p8 = pnand %p3351_p5, %p3617_p1 }
  0x36   : > { %p3354_p9 = pneg %p3353_p8 }
  0x38   : > { %p3359_p0 = pnand %p3357_p13, %p3354_p9 }
  0x3a   : > { %3362 = shalt.err (!%p3359_p0)
}
  0x3b   : > { %s3363_s22 = scalar_lea.vmem %s280_s28, 512  ;;  %p3371_p6 = scmp.lt.s32.totalorder %s280_s28, %s280_s28 }
  0x3c   : > { %p3364_p2 = scmp.ne.s32.totalorder %s280_s28, %s3363_s22  ;;  %p3372_p7 = scmp.lt.s32.totalorder %s3363_s22, %s3363_s22 }
  0x3e   : > { %p3366_p3 = pnand %p3364_p2, %p3617_p1  ;;  %p3373_p10 = por %p3372_p7, %p3371_p6 }
  0x40   : > { %p3367_p4 = pneg %p3366_p3 }
  0x42   : > { %p3374_p12 = pnand %p3373_p10, %p3367_p4 }
  0x44   : > { %3377 = shalt.err (!%p3374_p12)
}
  0x45   : > { %3166 = dma.hbm_to_vmem [thread:$0]  (!%p3600_p11), %s4135_s3, 512, %s280_s28, [#allocation6], %s3481_s17, %s3481_s17, %s3482_s21  }
  0x46   : > { %s318_s9 = sand.u32 1, %s3474_s13   ;;  %s3378_s25 = scalar_lea.hbm %s4137_s5, 2048 }
  0x47   : > { %p3379_p5 = scmp.ne.s32.totalorder %s4137_s5, %s3378_s25  ;;  %p3385_p13 = scmp.lt.u32.totalorder %s3378_s25, %s4137_s5 }
  0x49   : > { %p3381_p8 = pnand %p3379_p5, %p3617_p1 }
  0x4b   : > { %p3382_p9 = pneg %p3381_p8 }
  0x4d   : > { %p3387_p0 = pnand %p3385_p13, %p3382_p9 }
  0x4f   : > { %3390 = shalt.err (!%p3387_p0)
}
  0x50   : > { %s3391_s28 = scalar_lea.vmem %s296_s10, 2048  ;;  %p3399_p6 = scmp.lt.s32.totalorder %s296_s10, %s296_s10 }
  0x51   : > { %p3392_p2 = scmp.ne.s32.totalorder %s296_s10, %s3391_s28  ;;  %p3400_p7 = scmp.lt.s32.totalorder %s3391_s28, %s3391_s28 }
  0x53   : > { %p3394_p3 = pnand %p3392_p2, %p3617_p1  ;;  %p3401_p10 = por %p3400_p7, %p3399_p6 }
  0x55   : > { %p3395_p4 = pneg %p3394_p3 }
  0x57   : > { %p3402_p12 = pnand %p3401_p10, %p3395_p4 }
  0x59   : > { %3405 = shalt.err (!%p3402_p12)
}
  0x5a   : > { %s3485_s16 = smov 512   ;;  %s3486_s22 = smov 32  }
  0x5b   : > { %3169 = dma.hbm_to_vmem [thread:$0]  (!%p3600_p11), %s4137_s5, 2048, %s296_s10, [#allocation9], %s3485_s16, %s3485_s16, %s3486_s22  }
  0x5c   : > { %s2869_s15 = sshll.u32 %s318_s9, 6  ;;  %s2870_s30 = sshll.u32 %s3478_s14, 7 }
  0x5d   : > { %s3680_s26 = scalar_lea.hbm %s4132_s0, %s2870_s30  ;;  %s322_s27 = scalar_lea.vmem [#allocation3], %s2869_s15 }
  0x5e   : > { %s328_s29 = sshll.u32 %s322_s27, 4  ;;  %s3684_s23 = scalar_lea.sflag [#allocation4], %s318_s9  ;;  %s3682_s29 = int_to_ptr.vmem [resolvable:$true] %s328_s29 }
  0x5f   : > { %s3406_s11 = scalar_lea.hbm %s3680_s26, 1024  ;;  %p4158_p11 = scmp.ne.s32.totalorder %s4156_s24, 0 }
  0x60   : > { %p3407_p1 = scmp.ne.s32.totalorder %s3680_s26, %s3406_s11  ;;  %s3411_s28 = scalar_lea.hbm %s4132_s0, 2048 }
  0x61   : > { %p3408_p5 = pneg %p4158_p11  ;;  %p3412_p13 = scmp.lt.u32.totalorder %s3680_s26, %s4132_s0 }
  0x62   : > { %p3413_p0 = scmp.lt.u32.totalorder %s3411_s28, %s3406_s11  ;;  %p3415_p3 = scmp.lt.u32.totalorder %s3406_s11, %s3680_s26 }
  0x63   : > { %p3409_p8 = pnand %p3408_p5, %p3407_p1 }
  0x64   : > { %p3414_p2 = por %p3413_p0, %p3412_p13 }
  0x65   : > { %p3410_p9 = pneg %p3409_p8 }
  0x66   : > { %p3416_p4 = por %p3415_p3, %p3414_p2 }
  0x68   : > { %p3417_p6 = pnand %p3416_p4, %p3410_p9 }
  0x6a   : > { %3420 = shalt.err (!%p3417_p6)
}
  0x6b   : > { %s3421_s9 = scalar_lea.vmem %s3682_s29, 1024  ;;  %s3487_s6 = smov [#allocation3]  }
  0x6c   : > { %p3422_p7 = scmp.ne.s32.totalorder %s3682_s29, %s3421_s9  ;;  %s3426_s7 = sshll.u32 %s3487_s6, 4  ;;  %s3427_s7 = int_to_ptr.vmem [resolvable:$false] %s3426_s7 }
  0x6d   : > { %s3428_s15 = scalar_lea.vmem %s3427_s7, 2048  ;;  %p3429_p1 = scmp.lt.s32.totalorder %s3682_s29, %s3427_s7 }
  0x6e   : > { %p3424_p10 = pnand %p3422_p7, %p3408_p5  ;;  %p3430_p8 = scmp.lt.s32.totalorder %s3428_s15, %s3421_s9 }
  0x70   : > { %p3425_p12 = pneg %p3424_p10  ;;  %p3431_p13 = por %p3430_p8, %p3429_p1 }
  0x72   : > { %p3432_p0 = pnand %p3431_p13, %p3425_p12 }
  0x74   : > { %3435 = shalt.err (!%p3432_p0)
}
  0x75   : > { %s3488_s30 = smov 256   ;;  %p4159_p5 = scmp.ne.s32.totalorder %s4154_s20, 0 }
  0x76   : > { %3173 = dma.hbm_to_vmem [thread:$0]  (!%p4158_p11), %s3680_s26, 1024, %s3682_s29, %s3684_s23, %s3488_s30, %s3481_s17, %s3482_s21  }
  0x77   : > { %340 = sbr.rel (%p4159_p5) target bundleno = 2227 (0x8b3), region = 56  ;;  %s342_s18 = sand.u32 (!%p4159_p5), 1, %s3470_s12  }
  0x78   : > { %s2872_s25 = sshll.u32 (!%p4159_p5), %s342_s18, 6  ;;  %s343_s27 = scalar_lea.sflag (!%p4159_p5), [#allocation4], %s342_s18 }
  0x79   : > { %s3717_s11 = scalar_lea.vmem (!%p4159_p5), [#allocation3], %s2872_s25  ;;  %p4160_p9 = scmp.ne.s32.totalorder (!%p4159_p5), %s4153_s19, 0 }
  0x7e   : > { %3453 = dma.done.wait (%p4160_p9), %s343_s27, 1024  }
  0x7f   : > { %3455 = vsyncadd (%p4160_p9), %s343_s27, 4294966272  ;;  %p4161_p2 = scmp.eq.s32.totalorder %s3568_s8, 0 }
  0x81   : > { %3457 = dma.done.wait (%p4161_p2), [#allocation6], 1024   ;;  %p4162_p11 = pmov %p4161_p2 }
  0x82   : > { %p4163_p3 = pmov %p4161_p2 }
  0x83   : > { %3459 = vsyncadd (%p4162_p11), [#allocation6], 4294966272 }
  0x84   : > { %3461 = dma.done.wait (%p4163_p3), [#allocation9], 2048   ;;  %p4164_p4 = pmov %p4161_p2 }
  0x85   : > { %v3489_v1 = vmov 1983009808   ;;  %v409_v3 = vlaneseq  ;;  %v3490_v6 = vmov 1934713408   ;;  %v540_v8 = vld [vmem:[#allocation5] sm:$0xff]  ;;  %v541_v9 = vld [vmem:[#allocation5 + $0x8] sm:$0xff] }
  0x86   : > { %3463 = vsyncadd (%p4164_p4), [#allocation9], 4294965248  ;;  %v407_v2 = vunpack.c.l.s4 %v3489_v1  ;;  %v471_v7 = vunpack.c.l.s4 %v3490_v6  ;;  %v542_v10 = vld [vmem:[#allocation5 + $0x10] sm:$0xff]  ;;  %v3114_v11 = vpack.c.bf16 %v541_v9, %v540_v8  ;;  %v543_v12 = vld [vmem:[#allocation5 + $0x18] sm:$0xff]  ;;  %vm551_vm0 = vcmask 261120   ;;  %s3493_s24 = smov 96  }
  0x87   : > { %v3732_v5 = vshrl.u32 %v409_v3, 7  ;;  %v3118_v13 = vpack.c.bf16 %v543_v12, %v542_v10  ;;  %v3230_v16 = vld [vmem:[%s3717_s11] ss:$16 sps:$4 sm:$0xff]   ;;  %v3232_v17 = vld [vmem:[%s3717_s11 + $0x4] ss:$16 sps:$4 sm:$0xff]   ;;  %v3491_v57 = vmov 0.0  }
  0x88   : > { %v408_v4 = vunpack.c.0.s8 %v407_v2  ;;  %v472_v15 = vunpack.c.0.s8 %v471_v7  ;;  %3115 = vmatprep.subr.bf16.mxu0 %v3114_v11  ;;  %v3233_v18 = vld [vmem:[%s3717_s11 + $0x8] ss:$16 sps:$4 sm:$0xff]   ;;  %v3235_v19 = vld [vmem:[%s3717_s11 + $0xc] ss:$16 sps:$4 sm:$0xff]   ;;  %v3236_v20 = vld [vmem:[%s3717_s11 + $0x20] ss:$16 sps:$4 sm:$0xff]   ;;  %3019 = vmatprep.subr.mxu1 %v3491_v57 }
  0x89   : > { %3117 = vmatpush3.bf16.msra.mxu0 %v3114_v11  ;;  %v3238_v21 = vld [vmem:[%s3717_s11 + $0x24] ss:$16 sps:$4 sm:$0xff]   ;;  %v3239_v24 = vld [vmem:[%s3717_s11 + $0x28] ss:$16 sps:$4 sm:$0xff]   ;;  %v3241_v25 = vld [vmem:[%s3717_s11 + $0x2c] ss:$16 sps:$4 sm:$0xff]  }
  0x8a   : > { %v411_v14 = vsub.s32 %v408_v4, %v3732_v5  ;;  %3119 = vmatprep.subr.bf16.mxu0 %v3118_v13  ;;  %v475_v26 = vsub.s32 %v472_v15, %v3732_v5  ;;  %vm3492_vm1 = vmmov 0   ;;  %v2877_v58 = vld [vmem:[%s4134_s2] ss:$0 sm:$0xff]  ;;  %s3494_s17 = smov 64   ;;  %vm1297_vm2 = vcmask 64512   ;;  %s4165_s14 = sld [smem:[#allocation15_spill]] }
  0x8b   : > { %3021 = vmatprep.mubr.msk.f32.mxu1 %vm3492_vm1, %v3491_v57  ;;  %s4166_s16 = sld [smem:[#allocation16_spill]]  ;;  %p392_p6 = scmp.lt.s32.totalorder %s3568_s8, 1  ;;  %vm2753_vm3 = vcmask 1041409   ;;  %vm2755_vm4 = vcmask 1042434   ;;  %vm2757_vm5 = vcmask 1043459   ;;  %vm2759_vm6 = vcmask 1044484  }
  0x8c   : > { %v412_v22 = vrot.slane %v3230_v16, %v411_v14  ;;  %v428_v23 = vrot.slane %v3233_v18, %v411_v14  ;;  %v419_v27 = vrot.slane %v3232_v17, %v411_v14  ;;  %v444_v28 = vrot.slane %v3236_v20, %v411_v14  ;;  %s4167_s7 = sld [smem:[#allocation17_spill]] }
  0x8d   : > { %v435_v29 = vrot.slane %v3235_v19, %v411_v14  ;;  %v451_v30 = vrot.slane %v3238_v21, %v411_v14  ;;  %3121 = vmatpush3.bf16.msra.mxu0 %v3118_v13  ;;  %v460_v31 = vrot.slane %v3239_v24, %v411_v14  ;;  %v467_v34 = vrot.slane %v3241_v25, %v411_v14  ;;  %s4174_s8 = smov (!%p392_p6, %s3568_s8), 1 }
  0x8e   : > { %v468_v32 = vcombine.low %v412_v22, %v428_v23  ;;  %v469_v33 = vcombine.high %v412_v22, %v428_v23  ;;  %3014 = vmatprep.subr.mxu0 %v3491_v57  ;;  %s2876_s22 = sshll.u32 %s4174_s8, 3  ;;  %vm2761_vm7 = vcmask 1045509   ;;  %vm2763_vm8 = vcmask 1046534  }
  0x8f   : > { %v484_v35 = vcombine.low %v419_v27, %v435_v29  ;;  %v500_v37 = vcombine.low %v444_v28, %v460_v31  ;;  %v501_v38 = vcombine.high %v444_v28, %v460_v31  ;;  %v516_v40 = vcombine.low %v451_v30, %v467_v34 }
  0x90   : > { %v476_v36 = vrot.slane %v468_v32, %v475_v26  ;;  %v483_v39 = vrot.slane %v469_v33, %v475_v26  ;;  %v485_v44 = vcombine.high %v419_v27, %v435_v29  ;;  %v517_v45 = vcombine.high %v451_v30, %v467_v34 }
  0x91   : > { %v508_v41 = vrot.slane %v500_v37, %v475_v26  ;;  %v515_v42 = vrot.slane %v501_v38, %v475_v26  ;;  %v492_v43 = vrot.slane %v484_v35, %v475_v26  ;;  %v524_v49 = vrot.slane %v516_v40, %v475_v26 }
  0x92   : > { %v499_v52 = vrot.slane %v485_v44, %v475_v26  ;;  %v531_v53 = vrot.slane %v517_v45, %v475_v26  ;;  %vm2765_vm9 = vcmask 1047559   ;;  %s395_s15 = scalar_lea.vmem %s4167_s7, %s2876_s22 }
  0x93   : > { %v532_v46 = vcombine.low %v476_v36, %v508_v41  ;;  %v533_v47 = vcombine.high %v476_v36, %v508_v41  ;;  %v534_v48 = vcombine.low %v483_v39, %v515_v42  ;;  %v535_v50 = vcombine.high %v483_v39, %v515_v42 }
  0x94   : > { %v536_v51 = vcombine.low %v492_v43, %v524_v49  ;;  %v537_v54 = vcombine.high %v492_v43, %v524_v49  ;;  %v538_v55 = vcombine.low %v499_v52, %v531_v53  ;;  %v539_v56 = vcombine.high %v499_v52, %v531_v53 }
  0x95   : > { %3002 = vmatprep.mubr.msk.f32.mxu0 %vm551_vm0, %v532_v46 }
  0x96   : > { %3003 = vmatmul.mubr.msk.f32.vlgmr.msra.gmra.mrb[0].mxu0 %vm551_vm0, %v533_v47 }
  0x97   : > { %3005 = vmatprep.mubr.msk.f32.mxu0 %vm551_vm0, %v534_v48 }
  0x9a   : > { %3006 = vmatmul.mubr.msk.f32.gmra.mrb[2].mxu0 %vm551_vm0, %v535_v50 }
  0x9b   : > { %3008 = vmatprep.mubr.msk.f32.mxu0 %vm551_vm0, %v536_v51 }
  0x9e   : > { %3009 = vmatmul.mubr.msk.f32.gmra.mrb[4].mxu0 %vm551_vm0, %v537_v54 }
  0x9f   : > { %3011 = vmatprep.mubr.msk.f32.mxu0 %vm551_vm0, %v538_v55 }
  0xa2   : > { %3012 = vmatmul.mubr.msk.f32.gmra.mrb[6].mxu0 %vm551_vm0, %v539_v56 }
  0xa3   : > { %3016 = vmatprep.mubr.msk.f32.mxu0 %vm3492_vm1, %v3491_v57 }
 0x169   : > { %v3004_v59 = vpop.f32.mrb[0].mxu0 }
 0x16a   : > { %v642_v60 = vpop.f32.mrb[1].mxu0  ;;  %v3761_v0 = vadd.f32 %v3004_v59, %v2877_v58 }
 0x16b   : > { %v643_v61 = vadd.f32 %v2877_v58, %v642_v60 }
 0x16d   : > { %v3007_v62 = vpop.f32.mrb[2].mxu0  ;;  %682 = vrot.lane.b32.xlu0 %v643_v61, %s3493_s24 }
 0x16e   : > { %v652_v63 = vpop.f32.mrb[3].mxu0  ;;  %v3767_v6 = vadd.f32 %v3007_v62, %v2877_v58 }
 0x16f   : > { %v3763_v1 = vadd.f32 %v2877_v58, %v652_v63 }
 0x171   : > { %836 = vrot.lane.b32.xlu1 %v3763_v1, %s3493_s24  ;;  %759 = vrot.lane.b32.xlu0 %v3761_v0, %s3493_s24  ;;  %v3010_v2 = vpop.f32.mrb[4].mxu0 }
 0x172   : > { %v662_v4 = vpop.f32.mrb[5].mxu0  ;;  %v3772_v8 = vadd.f32 %v3010_v2, %v2877_v58 }
 0x173   : > { %v3769_v7 = vadd.f32 %v2877_v58, %v662_v4 }
 0x175   : > { %913 = vrot.lane.b32.xlu1 %v3767_v6, %s3493_s24  ;;  %v3013_v9 = vpop.f32.mrb[6].mxu0  ;;  %990 = vrot.lane.b32.xlu0 %v3769_v7, %s3493_s24 }
 0x176   : > { %v672_v10 = vpop.f32.mrb[7].mxu0  ;;  %v3778_v12 = vadd.f32 %v3013_v9, %v2877_v58 }
 0x177   : > { %v3775_v11 = vadd.f32 %v2877_v58, %v672_v10 }
 0x179   : > { %1067 = vrot.lane.b32.xlu1 %v3772_v8, %s3493_s24  ;;  %1144 = vrot.lane.b32.xlu0 %v3775_v11, %s3493_s24 }
 0x17d   : > { %1221 = vrot.lane.b32.xlu1 %v3778_v12, %s3493_s24 }
 0x181   : > { %1386 = vrot.lane.b32.xlu1 %v643_v61, %s3494_s17 }
 0x1df   : > { %v683_v13 = vpop.permute.xlu0 %682 }
 0x1e0   : > { %3015 = vmatpush3.xpose.msk.msra.mxu0 %vm551_vm0, %v683_v13 }
 0x1e1   : > { %3039 = vmatprep.subr.mxu0 %v3491_v57 }
 0x1e3   : > { %v837_v14 = vpop.permute.xlu1 %836  ;;  %3017 = vmatmul.mubr.msk.f32.vlgmr.msra.gmra.mrb[8].mxu0 %vm551_vm0, %v643_v61  ;;  %v760_v15 = vpop.permute.xlu0 %759 }
 0x1e4   : > { %3020 = vmatpush3.xpose.msk.msra.mxu1 %vm551_vm0, %v760_v15  ;;  %3041 = vmatprep.mubr.msk.f32.mxu0 %vm3492_vm1, %v3491_v57 }
 0x1e5   : > { %3024 = vmatprep.subr.mxu1 %v3491_v57 }
 0x1e7   : > { %v914_v16 = vpop.permute.xlu1 %913  ;;  %3022 = vmatmul.mubr.msk.f32.vlgmr.msra.gmra.mrb[0].mxu1 %vm551_vm0, %v3761_v0  ;;  %v991_v18 = vpop.permute.xlu0 %990 }
 0x1e8   : > { %3025 = vmatpush3.xpose.msk.msra.mxu1 %vm551_vm0, %v837_v14  ;;  %3026 = vmatprep.mubr.msk.f32.mxu1 %vm3492_vm1, %v3491_v57 }
 0x1e9   : > { %3029 = vmatprep.subr.mxu1 %v3491_v57 }
 0x1eb   : > { %v1068_v17 = vpop.permute.xlu1 %1067  ;;  %3027 = vmatmul.mubr.msk.f32.vlgmr.msra.gmra.mrb[2].mxu1 %vm551_vm0, %v3763_v1  ;;  %v1145_v20 = vpop.permute.xlu0 %1144 }
 0x1ec   : > { %3030 = vmatpush3.xpose.msk.msra.mxu1 %vm551_vm0, %v914_v16  ;;  %3040 = vmatpush3.xpose.msk.msra.mxu0 %vm551_vm0, %v1068_v17 }
 0x1ed   : > { %3031 = vmatprep.mubr.msk.f32.mxu1 %vm3492_vm1, %v3491_v57  ;;  %3034 = vmatprep.subr.mxu1 %v3491_v57 }
 0x1ee   : > { %3049 = vmatprep.subr.mxu0 %v3491_v57 }
 0x1ef   : > { %v1222_v19 = vpop.permute.xlu1 %1221  ;;  %3032 = vmatmul.mubr.msk.f32.vlgmr.msra.gmra.mrb[4].mxu1 %vm551_vm0, %v3767_v6  ;;  %3042 = vmatmul.mubr.msk.f32.vlgmr.msra.gmra.mrb[10].mxu0 %vm551_vm0, %v3772_v8 }
 0x1f0   : > { %3035 = vmatpush3.xpose.msk.msra.mxu1 %vm551_vm0, %v991_v18  ;;  %3050 = vmatpush3.xpose.msk.msra.mxu0 %vm551_vm0, %v1222_v19 }
 0x1f1   : > { %3036 = vmatprep.mubr.msk.f32.mxu1 %vm3492_vm1, %v3491_v57  ;;  %3051 = vmatprep.mubr.msk.f32.mxu0 %vm3492_vm1, %v3491_v57 }
 0x1f2   : > { %3044 = vmatprep.subr.mxu1 %v3491_v57  ;;  %3059 = vmatprep.subr.mxu0 %v3491_v57 }
 0x1f3   : > { %3037 = vmatmul.mubr.msk.f32.vlgmr.msra.gmra.mrb[6].mxu1 %vm551_vm0, %v3769_v7  ;;  %3052 = vmatmul.mubr.msk.f32.vlgmr.msra.gmra.mrb[12].mxu0 %vm551_vm0, %v3778_v12  ;;  %v1387_v21 = vpop.permute.xlu1 %1386 }
 0x1f4   : > { %3045 = vmatpush3.xpose.msk.msra.mxu1 %vm551_vm0, %v1145_v20  ;;  %3046 = vmatprep.mubr.msk.f32.mxu1 %vm3492_vm1, %v3491_v57 }
 0x1f5   : > { %3054 = vmatprep.subr.mxu1 %v3491_v57  ;;  %3061 = vmatprep.mubr.msk.f32.mxu0 %vm3492_vm1, %v3491_v57 }
 0x1f7   : > { %3047 = vmatmul.mubr.msk.f32.vlgmr.msra.gmra.mrb[8].mxu1 %vm551_vm0, %v3775_v11 }
 0x1f8   : > { %3055 = vmatpush3.msra.mxu1 %v1387_v21  ;;  %3056 = vmatprep.mubr.msk.f32.mxu1 %vm3492_vm1, %v3491_v57 }
 0x1f9   : > { %3064 = vmatprep.subr.mxu1 %v3491_v57 }
 0x2b6   : > { %v754_v22 = vpop.f32.mrb[8].mxu0 }
 0x2b7   : > { %v3018_v23 = vpop.f32.mrb[9].mxu0  ;;  %v1298_v24 = vsel %vm1297_vm2, %v754_v22, -inf }
 0x2b8   : > { %1299 = vmax.xlane.f32.xlu0 %v1298_v24 }
 0x2ba   : > { %v831_v25 = vpop.f32.mrb[0].mxu1 }
 0x2bb   : > { %v3023_v26 = vpop.f32.mrb[1].mxu1  ;;  %v1301_v27 = vsel %vm1297_vm2, %v831_v25, -inf }
 0x2bc   : > { %1302 = vmax.xlane.f32.xlu1 %v1301_v27 }
 0x2be   : > { %v908_v28 = vpop.f32.mrb[2].mxu1 }
 0x2bf   : > { %v3028_v29 = vpop.f32.mrb[3].mxu1  ;;  %v1304_v30 = vsel %vm1297_vm2, %v908_v28, -inf }
 0x2c0   : > { %1305 = vmax.xlane.f32.xlu0 %v1304_v30 }
 0x2c2   : > { %v985_v31 = vpop.f32.mrb[4].mxu1  ;;  %v1139_v32 = vpop.f32.mrb[10].mxu0 }
 0x2c3   : > { %v3033_v33 = vpop.f32.mrb[5].mxu1  ;;  %v3043_v34 = vpop.f32.mrb[11].mxu0  ;;  %v1313_v35 = vsel %vm1297_vm2, %v1139_v32, -inf  ;;  %v1307_v40 = vsel %vm1297_vm2, %v985_v31, -inf }
 0x2c4   : > { %1314 = vmax.xlane.f32.xlu0 %v1313_v35 }
 0x2c6   : > { %v1062_v36 = vpop.f32.mrb[6].mxu1  ;;  %v3835_v37 = vpop.f32.mrb[12].mxu0 }
 0x2c7   : > { %v3038_v38 = vpop.f32.mrb[7].mxu1  ;;  %v3053_v39 = vpop.f32.mrb[13].mxu0  ;;  %v1319_v43 = vsel %vm1297_vm2, %v3835_v37, -inf  ;;  %v1310_v44 = vsel %vm1297_vm2, %v1062_v36, -inf }
 0x2c8   : > { %1308 = vmax.xlane.f32.xlu0 %v1307_v40 }
 0x2ca   : > { %v1216_v41 = vpop.f32.mrb[8].mxu1 }
 0x2cb   : > { %v3048_v42 = vpop.f32.mrb[9].mxu1  ;;  %v1316_v45 = vsel %vm1297_vm2, %v1216_v41, -inf }
 0x2cc   : > { %1320 = vmax.xlane.f32.xlu0 %v1319_v43 }
 0x2cd   : > { %1538 = vrot.lane.b32.xlu1 %v3763_v1, %s3494_s17 }
 0x2e2   : > { %1462 = vrot.lane.b32.xlu0 %v3761_v0, %s3494_s17 }
 0x2f1   : > { %1311 = vmax.xlane.f32.xlu1 %v1310_v44 }
 0x2f5   : > { %1317 = vmax.xlane.f32.xlu1 %v1316_v45 }
 0x306   : > { %1614 = vrot.lane.b32.xlu1 %v3767_v6, %s3494_s17 }
 0x345   : > { %v1300_v46 = vpop.xlane.xlu0 %1299 }
 0x346   : > { %v1322_v47 = vsub.f32 %v754_v22, %v1300_v46 }
 0x348   : > { %v1330_v48 = vmul.f32 1.442695, %v1322_v47 }
 0x349   : > { %v1303_v49 = vpop.xlane.xlu1 %1302 }
 0x34a   : > { %3242 = vpow2.f32 %v1330_v48  ;;  %v1323_v50 = vsub.f32 %v831_v25, %v1303_v49  ;;  %v1994_v49 = vld [vmem:[#allocation7] sm:$0xff] }
 0x34c   : > { %v1332_v51 = vmul.f32 1.442695, %v1323_v50  ;;  %v1995_v50 = vld [vmem:[#allocation7 + $0x8] sm:$0xff] }
 0x34d   : > { %v1306_v52 = vpop.xlane.xlu0 %1305  ;;  %v1539_v16 = vpop.permute.xlu1 %1538 }
 0x34e   : > { %3244 = vpow2.f32 %v1332_v51  ;;  %v1324_v53 = vsub.f32 %v908_v28, %v1306_v52 }
 0x350   : > { %v1334_v54 = vmul.f32 1.442695, %v1324_v53 }
 0x351   : > { %v1315_v55 = vpop.xlane.xlu0 %1314 }
 0x352   : > { %3246 = vpow2.f32 %v1334_v54  ;;  %v1327_v56 = vsub.f32 %v1139_v32, %v1315_v55  ;;  %v3122_v54 = vpack.c.bf16 %v1995_v50, %v1994_v49 }
 0x354   : > { %v3243_v58 = vpop.eup %3242  ;;  %v1340_v59 = vmul.f32 1.442695, %v1327_v56 }
 0x355   : > { %v1309_v60 = vpop.xlane.xlu0 %1308  ;;  %v1346_v61 = vsel %vm1297_vm2, %v3243_v58, 0.0 }
 0x356   : > { %3248 = vpow2.f32 %v1340_v59  ;;  %v1325_v62 = vsub.f32 %v985_v31, %v1309_v60  ;;  %1347 = vadd.xlane.f32.xlu1 %v1346_v61  ;;  %v1996_v60 = vld [vmem:[#allocation7 + $0x10] sm:$0xff]  ;;  %v1997_v61 = vld [vmem:[#allocation7 + $0x18] sm:$0xff] }
 0x358   : > { %v3245_v63 = vpop.eup %3244  ;;  %v1336_v0 = vmul.f32 1.442695, %v1325_v62  ;;  %v3126_v62 = vpack.c.bf16 %v1997_v61, %v1996_v60 }
 0x359   : > { %v1321_v1 = vpop.xlane.xlu0 %1320  ;;  %v1349_v2 = vsel %vm1297_vm2, %v3245_v63, 0.0 }
 0x35a   : > { %3250 = vpow2.f32 %v1336_v0  ;;  %1350 = vadd.xlane.f32.xlu0 %v1349_v2  ;;  %v1329_v22 = vsub.f32 %v3835_v37, %v1321_v1 }
 0x35c   : > { %v3247_v4 = vpop.eup %3246  ;;  %v1344_v24 = vmul.f32 1.442695, %v1329_v22 }
 0x35d   : > { %v1463_v6 = vpop.permute.xlu0 %1462  ;;  %v1352_v9 = vsel %vm1297_vm2, %v3247_v4, 0.0 }
 0x35e   : > { %1353 = vadd.xlane.f32.xlu1 %v1352_v9  ;;  %3060 = vmatpush3.msra.mxu0 %v1463_v6 }
 0x35f   : > { %3069 = vmatprep.subr.mxu0 %v3491_v57 }
 0x360   : > { %v3852_v10 = vpop.eup %3248 }
 0x361   : > { %v1361_v13 = vsel %vm1297_vm2, %v3852_v10, 0.0 }
 0x362   : > { %1362 = vadd.xlane.f32.xlu0 %v1361_v13 }
 0x364   : > { %v3251_v14 = vpop.eup %3250 }
 0x365   : > { %v1355_v15 = vsel %vm1297_vm2, %v3251_v14, 0.0 }
 0x366   : > { %1356 = vadd.xlane.f32.xlu0 %v1355_v15 }
 0x36f   : > { %1766 = vrot.lane.b32.xlu1 %v3772_v8, %s3494_s17 }
 0x37c   : > { %1690 = vrot.lane.b32.xlu0 %v3769_v7, %s3494_s17 }
 0x37e   : > { %v1312_v17 = vpop.xlane.xlu1 %1311 }
 0x37f   : > { %v1326_v18 = vsub.f32 %v1062_v36, %v1312_v17 }
 0x381   : > { %v1338_v19 = vmul.f32 1.442695, %v1326_v18 }
 0x382   : > { %v1318_v20 = vpop.xlane.xlu1 %1317 }
 0x383   : > { %v1328_v21 = vsub.f32 %v1216_v41, %v1318_v20  ;;  %3252 = vpow2.f32 %v1338_v19 }
 0x385   : > { %v1342_v23 = vmul.f32 1.442695, %v1328_v21  ;;  %v2910_v21 = vld [vmem:[%s4136_s4] ss:$0 sm:$0xff] }
 0x386   : > { %v1615_v29 = vpop.permute.xlu1 %1614 }
 0x387   : > { %3254 = vpow2.f32 %v1342_v23 }
 0x388   : > { %3256 = vpow2.f32 %v1344_v24 }
 0x38d   : > { %v3862_v25 = vpop.eup %3252 }
 0x38e   : > { %v1358_v8 = vsel %vm1297_vm2, %v3862_v25, 0.0 }
 0x391   : > { %v3866_v26 = vpop.eup %3254 }
 0x392   : > { %v1364_v7 = vsel %vm1297_vm2, %v3866_v26, 0.0  ;;  %v3870_v27 = vpop.eup %3256 }
 0x393   : > { %1359 = vadd.xlane.f32.xlu1 %v1358_v8  ;;  %v1367_v28 = vsel %vm1297_vm2, %v3870_v27, 0.0 }
 0x397   : > { %1365 = vadd.xlane.f32.xlu1 %v1364_v7 }
 0x39b   : > { %1368 = vadd.xlane.f32.xlu0 %v1367_v28 }
 0x3a8   : > { %1918 = vrot.lane.b32.xlu1 %v3778_v12, %s3494_s17 }
 0x3b1   : > { %1842 = vrot.lane.b32.xlu0 %v3775_v11, %s3494_s17 }
 0x3e3   : > { %v1348_v30 = vpop.xlane.xlu1 %1347 }
 0x3e4   : > { %3258 = vrcp.f32 %v1348_v30 }
 0x3e7   : > { %v1351_v31 = vpop.xlane.xlu0 %1350 }
 0x3e8   : > { %3260 = vrcp.f32 %v1351_v31 }
 0x3eb   : > { %v1354_v32 = vpop.xlane.xlu1 %1353 }
 0x3ec   : > { %3262 = vrcp.f32 %v1354_v32 }
 0x3ee   : > { %v3259_v33 = vpop.eup %3258 }
 0x3ef   : > { %v1378_v34 = vmul.f32 %v3259_v33, %v3243_v58  ;;  %v1363_v35 = vpop.xlane.xlu0 %1362  ;;  %v1767_v43 = vpop.permute.xlu1 %1766 }
 0x3f1   : > { %3057 = vmatmul.mubr.msk.f32.vlgmr.msra.gmra.mrb[10].mxu1 %vm1297_vm2, %v1378_v34 }
 0x3f2   : > { %v3261_v36 = vpop.eup %3260  ;;  %3065 = vmatpush3.msra.mxu1 %v1539_v16  ;;  %3066 = vmatprep.mubr.msk.f32.mxu1 %vm3492_vm1, %v3491_v57 }
 0x3f3   : > { %v1379_v12 = vmul.f32 %v3261_v36, %v3245_v63  ;;  %v1357_v37 = vpop.xlane.xlu0 %1356  ;;  %3074 = vmatprep.subr.mxu1 %v3491_v57 }
 0x3f4   : > { %3264 = vrcp.f32 %v1357_v37 }
 0x3f5   : > { %3062 = vmatmul.mubr.msk.f32.vlgmr.msra.gmra.mrb[14].mxu0 %vm1297_vm2, %v1379_v12  ;;  %3266 = vrcp.f32 %v1363_v35 }
 0x3f6   : > { %v3263_v11 = vpop.eup %3262  ;;  %3070 = vmatpush3.msra.mxu0 %v1615_v29  ;;  %3071 = vmatprep.mubr.msk.f32.mxu0 %vm3492_vm1, %v3491_v57 }
 0x3f7   : > { %v1380_v38 = vmul.f32 %v3263_v11, %v3247_v4  ;;  %v1691_v39 = vpop.permute.xlu0 %1690  ;;  %3079 = vmatprep.subr.mxu0 %v3491_v57 }
 0x3f9   : > { %3067 = vmatmul.mubr.msk.f32.vlgmr.msra.gmra.mrb[12].mxu1 %vm1297_vm2, %v1380_v38 }
 0x3fa   : > { %3075 = vmatpush3.msra.mxu1 %v1691_v39  ;;  %3076 = vmatprep.mubr.msk.f32.mxu1 %vm3492_vm1, %v3491_v57 }
 0x3fb   : > { %3084 = vmatprep.subr.mxu1 %v3491_v57 }
 0x3fe   : > { %v3265_v40 = vpop.eup %3264 }
 0x3ff   : > { %v1381_v41 = vmul.f32 %v3265_v40, %v3251_v14  ;;  %v3267_v42 = vpop.eup %3266 }
 0x400   : > { %v1383_v44 = vmul.f32 %v3267_v42, %v3852_v10 }
 0x401   : > { %3072 = vmatmul.mubr.msk.f32.vlgmr.msra.gmra.mrb[16].mxu0 %vm1297_vm2, %v1381_v41 }
 0x402   : > { %3080 = vmatpush3.msra.mxu0 %v1767_v43  ;;  %3081 = vmatprep.mubr.msk.f32.mxu0 %vm3492_vm1, %v3491_v57 }
 0x403   : > { %3089 = vmatprep.subr.mxu0 %v3491_v57 }
 0x405   : > { %3082 = vmatmul.mubr.msk.f32.vlgmr.msra.gmra.mrb[18].mxu0 %vm1297_vm2, %v1383_v44 }
 0x406   : > { %3091 = vmatprep.mubr.msk.f32.mxu0 %vm3492_vm1, %v3491_v57 }
 0x420   : > { %v1360_v45 = vpop.xlane.xlu1 %1359 }
 0x421   : > { %3268 = vrcp.f32 %v1360_v45 }
 0x424   : > { %v1366_v46 = vpop.xlane.xlu1 %1365 }
 0x425   : > { %3270 = vrcp.f32 %v1366_v46 }
 0x428   : > { %v1919_v47 = vpop.permute.xlu1 %1918  ;;  %v1369_v48 = vpop.xlane.xlu0 %1368 }
 0x429   : > { %3272 = vrcp.f32 %v1369_v48  ;;  %3090 = vmatpush3.msra.mxu0 %v1919_v47 }
 0x42b   : > { %v3269_v51 = vpop.eup %3268 }
 0x42c   : > { %v1382_v52 = vmul.f32 %v3269_v51, %v3862_v25  ;;  %v1843_v53 = vpop.permute.xlu0 %1842 }
 0x42e   : > { %3077 = vmatmul.mubr.msk.f32.vlgmr.msra.gmra.mrb[14].mxu1 %vm1297_vm2, %v1382_v52 }
 0x42f   : > { %v3271_v55 = vpop.eup %3270  ;;  %3085 = vmatpush3.msra.mxu1 %v1843_v53  ;;  %3086 = vmatprep.mubr.msk.f32.mxu1 %vm3492_vm1, %v3491_v57 }
 0x430   : > { %v1384_v56 = vmul.f32 %v3271_v55, %v3866_v26  ;;  %3123 = vmatprep.subr.bf16.mxu1 %v3122_v54 }
 0x432   : > { %3087 = vmatmul.mubr.msk.f32.vlgmr.msra.gmra.mrb[16].mxu1 %vm1297_vm2, %v1384_v56 }
 0x433   : > { %v3273_v58 = vpop.eup %3272  ;;  %3125 = vmatpush3.bf16.msra.mxu1 %v3122_v54 }
 0x434   : > { %v1385_v59 = vmul.f32 %v3273_v58, %v3870_v27  ;;  %3127 = vmatprep.subr.bf16.mxu1 %v3126_v62 }
 0x436   : > { %3092 = vmatmul.mubr.msk.f32.vlgmr.msra.gmra.mrb[20].mxu0 %vm1297_vm2, %v1385_v59 }
 0x437   : > { %2365 = vmatprep.mubr.f32.mxu0 %v3491_v57  ;;  %3129 = vmatpush3.bf16.msra.mxu1 %v3126_v62 }
 0x4c4   : > { %v1458_v63 = vpop.f32.mrb[10].mxu1 }
 0x4c5   : > { %v3058_v0 = vpop.f32.mrb[11].mxu1  ;;  %3102 = vmatprep.mubr.msk.f32.mxu1 %vm551_vm0, %v1458_v63  ;;  %v2240_v63 = vld [vmem:[#allocation8 + $0x8] sm:$0xff] }
 0x4c6   : > { %v2244_v0 = vld [vmem:[#allocation8 + $0x28] sm:$0xff] }
 0x4c8   : > { %v1534_v1 = vpop.f32.mrb[14].mxu0 }
 0x4c9   : > { %v3063_v2 = vpop.f32.mrb[15].mxu0  ;;  %3103 = vmatmul.mubr.msk.f32.vlgmr.msra.gmra.mrb[18].mxu1 %vm551_vm0, %v1534_v1  ;;  %v2242_v1 = vld [vmem:[#allocation8 + $0x18] sm:$0xff] }
 0x4ca   : > { %v3130_v2 = vpack.c.bf16 %v2244_v0, %v2240_v63 }
 0x4cc   : > { %v1610_v4 = vpop.f32.mrb[12].mxu1  ;;  %3131 = vmatprep.subr.bf16.mxu0 %v3130_v2 }
 0x4cd   : > { %v3068_v6 = vpop.f32.mrb[13].mxu1  ;;  %3105 = vmatprep.mubr.msk.f32.mxu1 %vm551_vm0, %v1610_v4  ;;  %v2246_v4 = vld [vmem:[#allocation8 + $0x38] sm:$0xff] }
 0x4ce   : > { %v2239_v6 = vld [vmem:[#allocation8] sm:$0xff] }
 0x4d4   : > { %v1686_v9 = vpop.f32.mrb[16].mxu0 }
 0x4d5   : > { %v3073_v10 = vpop.f32.mrb[17].mxu0  ;;  %3106 = vmatmul.mubr.msk.f32.gmra.mrb[20].mxu1 %vm551_vm0, %v1686_v9  ;;  %v2243_v9 = vld [vmem:[#allocation8 + $0x20] sm:$0xff] }
 0x4d6   : > { %v3138_v10 = vpack.c.bf16 %v2246_v4, %v2242_v1 }
 0x4d8   : > { %v1838_v13 = vpop.f32.mrb[18].mxu0  ;;  %3139 = vmatprep.subr.bf16.mxu1 %v3138_v10 }
 0x4d9   : > { %v3083_v14 = vpop.f32.mrb[19].mxu0 }
 0x4da   : > { %v2241_v14 = vld [vmem:[#allocation8 + $0x10] sm:$0xff] }
 0x501   : > { %v1762_v15 = vpop.f32.mrb[14].mxu1 }
 0x502   : > { %v3078_v16 = vpop.f32.mrb[15].mxu1  ;;  %3108 = vmatprep.mubr.msk.f32.mxu1 %vm551_vm0, %v1762_v15  ;;  %v2245_v15 = vld [vmem:[#allocation8 + $0x30] sm:$0xff] }
 0x503   : > { %3109 = vmatmul.mubr.msk.f32.gmra.mrb[22].mxu1 %vm551_vm0, %v1838_v13  ;;  %v3132_v13 = vpack.c.bf16 %v2243_v9, %v2239_v6  ;;  %v3140_v16 = vpack.c.bf16 %v2245_v15, %v2241_v14 }
 0x505   : > { %v1914_v17 = vpop.f32.mrb[16].mxu1  ;;  %3133 = vmatpush1.bf16.msra.mxu0 %v3132_v13  ;;  %3141 = vmatpush1.bf16.msra.mxu1 %v3140_v16 }
 0x506   : > { %v3088_v18 = vpop.f32.mrb[17].mxu1  ;;  %3111 = vmatprep.mubr.msk.f32.mxu1 %vm551_vm0, %v1914_v17  ;;  %v2248_v17 = vld [vmem:[#allocation8 + $0x48] sm:$0xff] }
 0x507   : > { %v2252_v18 = vld [vmem:[#allocation8 + $0x68] sm:$0xff] }
 0x509   : > { %v1990_v19 = vpop.f32.mrb[20].mxu0 }
 0x50a   : > { %v3093_v20 = vpop.f32.mrb[21].mxu0  ;;  %3112 = vmatmul.mubr.msk.f32.gmra.mrb[24].mxu1 %vm551_vm0, %v1990_v19  ;;  %v2250_v19 = vld [vmem:[#allocation8 + $0x58] sm:$0xff] }
 0x50b   : > { %2478 = vmatprep.mubr.f32.mxu1 %v3491_v57  ;;  %v3134_v20 = vpack.c.bf16 %v2252_v18, %v2248_v17 }
 0x50d   : > { %3135 = vmatprep.subr.bf16.mxu0 %v3134_v20 }
 0x59c   : > { %v3104_v22 = vpop.f32.mrb[18].mxu1 }
 0x59d   : > { %v2101_v23 = vadd.f32 %v3104_v22, %v2910_v21  ;;  %v2095_v24 = vpop.f32.mrb[19].mxu1  ;;  %v2247_v22 = vld [vmem:[#allocation8 + $0x40] sm:$0xff] }
 0x59e   : > { %v2096_v25 = vadd.f32 %v2910_v21, %v2095_v24 }
 0x59f   : > { %v2137_v8 = vsel %vm551_vm0, %v2101_v23, 0.0 }
 0x5a0   : > { %2138 = vadd.xlane.f32.xlu1 %v2137_v8  ;;  %v2134_v26 = vsel %vm551_vm0, %v2096_v25, 0.0  ;;  %v2249_v8 = vld [vmem:[#allocation8 + $0x50] sm:$0xff] }
 0x5a1   : > { %2135 = vadd.xlane.f32.xlu0 %v2134_v26  ;;  %v2253_v26 = vld [vmem:[#allocation8 + $0x70] sm:$0xff] }
 0x5a8   : > { %v3107_v7 = vpop.f32.mrb[20].mxu1 }
 0x5a9   : > { %v2105_v27 = vpop.f32.mrb[21].mxu1  ;;  %v2111_v29 = vadd.f32 %v3107_v7, %v2910_v21  ;;  %v3144_v7 = vpack.c.bf16 %v2253_v26, %v2249_v8 }
 0x5aa   : > { %v2106_v28 = vadd.f32 %v2910_v21, %v2105_v27 }
 0x5ab   : > { %v2143_v31 = vsel %vm551_vm0, %v2111_v29, 0.0 }
 0x5ac   : > { %v2140_v30 = vsel %vm551_vm0, %v2106_v28, 0.0 }
 0x5ad   : > { %2141 = vadd.xlane.f32.xlu0 %v2140_v30 }
 0x5b1   : > { %2144 = vadd.xlane.f32.xlu0 %v2143_v31 }
 0x5d6   : > { %v3110_v32 = vpop.f32.mrb[22].mxu1 }
 0x5d7   : > { %v3923_v33 = vadd.f32 %v3110_v32, %v2910_v21  ;;  %v2115_v34 = vpop.f32.mrb[23].mxu1 }
 0x5d8   : > { %v3925_v35 = vadd.f32 %v2910_v21, %v2115_v34 }
 0x5d9   : > { %v2149_v36 = vsel %vm551_vm0, %v3923_v33, 0.0 }
 0x5da   : > { %2150 = vadd.xlane.f32.xlu0 %v2149_v36  ;;  %v2146_v12 = vsel %vm551_vm0, %v3925_v35, 0.0 }
 0x5db   : > { %2147 = vadd.xlane.f32.xlu1 %v2146_v12 }
 0x5dd   : > { %v3113_v37 = vpop.f32.mrb[24].mxu1 }
 0x5de   : > { %v3931_v11 = vadd.f32 %v3113_v37, %v2910_v21  ;;  %v2125_v38 = vpop.f32.mrb[25].mxu1 }
 0x5df   : > { %v3933_v39 = vadd.f32 %v2910_v21, %v2125_v38  ;;  %v2254_v21 = vld [vmem:[#allocation8 + $0x78] sm:$0xff] }
 0x5e0   : > { %v2155_v40 = vsel %vm551_vm0, %v3931_v11, 0.0  ;;  %v3142_v24 = vpack.c.bf16 %v2254_v21, %v2250_v19 }
 0x5e1   : > { %2156 = vadd.xlane.f32.xlu0 %v2155_v40  ;;  %v2152_v41 = vsel %vm551_vm0, %v3933_v39, 0.0 }
 0x5e2   : > { %2153 = vadd.xlane.f32.xlu1 %v2152_v41  ;;  %3143 = vmatprep.subr.bf16.mxu1 %v3142_v24 }
 0x5e3   : > { %3145 = vmatpush1.bf16.msra.mxu1 %v3144_v7  ;;  %v3495_v7 = vmov 0  }
 0x5e4   : > { %3228 = vset.pattern.permute.xlu1 %v3495_v7  ;;  %3229 = vset.pattern.permute.xlu0 %v3495_v7 }
 0x62d   : > { %v2139_v42 = vpop.xlane.xlu1 %2138 }
 0x62e   : > { %v2160_v43 = vmul.f32 0.03125, %v2139_v42  ;;  %v2136_v44 = vpop.xlane.xlu0 %2135 }
 0x62f   : > { %v2159_v45 = vmul.f32 0.03125, %v2136_v44 }
 0x630   : > { %v3939_v46 = vsub.f32 %v2101_v23, %v2160_v43  ;;  %v2251_v23 = vld [vmem:[#allocation8 + $0x60] sm:$0xff] }
 0x631   : > { %v3941_v47 = vsub.f32 %v2096_v25, %v2159_v45  ;;  %v3136_v25 = vpack.c.bf16 %v2251_v23, %v2247_v22 }
 0x632   : > { %v2176_v48 = vmul.f32 %v3939_v46, %v3939_v46 }
 0x633   : > { %v2175_v49 = vmul.f32 %v3941_v47, %v3941_v47  ;;  %3137 = vmatpush1.bf16.msra.mxu0 %v3136_v25 }
 0x634   : > { %v2186_v50 = vsel %vm551_vm0, %v2176_v48, 0.0 }
 0x635   : > { %2187 = vadd.xlane.f32.xlu0 %v2186_v50  ;;  %v2183_v51 = vsel %vm551_vm0, %v2175_v49, 0.0 }
 0x636   : > { %2184 = vadd.xlane.f32.xlu1 %v2183_v51 }
 0x63a   : > { %v2142_v52 = vpop.xlane.xlu0 %2141 }
 0x63b   : > { %v2161_v53 = vmul.f32 0.03125, %v2142_v52 }
 0x63d   : > { %v3949_v54 = vsub.f32 %v2106_v28, %v2161_v53 }
 0x63e   : > { %v2145_v55 = vpop.xlane.xlu0 %2144 }
 0x63f   : > { %v2162_v56 = vmul.f32 0.03125, %v2145_v55  ;;  %v2177_v58 = vmul.f32 %v3949_v54, %v3949_v54 }
 0x641   : > { %v3953_v59 = vsub.f32 %v2111_v29, %v2162_v56  ;;  %v2189_v60 = vsel %vm551_vm0, %v2177_v58, 0.0 }
 0x642   : > { %2190 = vadd.xlane.f32.xlu1 %v2189_v60 }
 0x643   : > { %v2178_v61 = vmul.f32 %v3953_v59, %v3953_v59 }
 0x645   : > { %v2192_v62 = vsel %vm551_vm0, %v2178_v61, 0.0 }
 0x646   : > { %2193 = vadd.xlane.f32.xlu0 %v2192_v62 }
 0x667   : > { %v2151_v27 = vpop.xlane.xlu0 %2150 }
 0x668   : > { %v2164_v28 = vmul.f32 0.03125, %v2151_v27  ;;  %v2148_v29 = vpop.xlane.xlu1 %2147  ;;  %v2259_v27 = vsub.s32 0, %v3732_v5 }
 0x669   : > { %v2163_v30 = vmul.f32 0.03125, %v2148_v29  ;;  %v2255_v29 = vld [vmem:[%s4165_s14] sm:$0xf] }
 0x66a   : > { %v3960_v31 = vsub.f32 %v3923_v33, %v2164_v28  ;;  %v2267_v28 = vsub.s32 2, %v3732_v5 }
 0x66b   : > { %v3963_v32 = vsub.f32 %v3925_v35, %v2163_v30  ;;  %v2263_v30 = vsub.s32 1, %v3732_v5 }
 0x66c   : > { %v2180_v34 = vmul.f32 %v3960_v31, %v3960_v31 }
 0x66d   : > { %v2179_v36 = vmul.f32 %v3963_v32, %v3963_v32 }
 0x66e   : > { %v2157_v12 = vpop.xlane.xlu0 %2156  ;;  %v2198_v37 = vsel %vm551_vm0, %v2180_v34, 0.0  ;;  %v2559_v34 = vld [vmem:[%s4166_s16] sm:$0xf] }
 0x66f   : > { %v2166_v38 = vmul.f32 0.03125, %v2157_v12  ;;  %v2154_v40 = vpop.xlane.xlu1 %2153  ;;  %2199 = vadd.xlane.f32.xlu0 %v2198_v37  ;;  %v2195_v41 = vsel %vm551_vm0, %v2179_v36, 0.0  ;;  %v4035_v36 = vrot.slane %v2255_v29, %v2263_v30 }
 0x670   : > { %v2165_v42 = vmul.f32 0.03125, %v2154_v40  ;;  %2196 = vadd.xlane.f32.xlu1 %v2195_v41  ;;  %v4040_v41 = vrot.slane %v2559_v34, %v2259_v27 }
 0x671   : > { %v3972_v33 = vsub.f32 %v3931_v11, %v2166_v38 }
 0x672   : > { %v3975_v35 = vsub.f32 %v3933_v39, %v2165_v42 }
 0x673   : > { %v2182_v43 = vmul.f32 %v3972_v33, %v3972_v33 }
 0x674   : > { %v2181_v44 = vmul.f32 %v3975_v35, %v3975_v35 }
 0x675   : > { %v2204_v45 = vsel %vm551_vm0, %v2182_v43, 0.0 }
 0x676   : > { %2205 = vadd.xlane.f32.xlu0 %v2204_v45  ;;  %v2201_v48 = vsel %vm551_vm0, %v2181_v44, 0.0  ;;  %v4044_v44 = vrot.slane %v2559_v34, %v2263_v30 }
 0x677   : > { %2202 = vadd.xlane.f32.xlu1 %v2201_v48 }
 0x6c2   : > { %v2188_v49 = vpop.xlane.xlu0 %2187 }
 0x6c3   : > { %v2208_v50 = vmul.f32 0.03125, %v2188_v49  ;;  %v2185_v51 = vpop.xlane.xlu1 %2184 }
 0x6c4   : > { %v2207_v11 = vmul.f32 0.03125, %v2185_v51 }
 0x6c5   : > { %v2216_v52 = vadd.f32 1e-05, %v2208_v50  ;;  %v4047_v50 = vrot.slane %v2559_v34, %v2267_v28 }
 0x6c6   : > { %v2215_v53 = vadd.f32 1e-05, %v2207_v11 }
 0x6c8   : > { %3274 = vrsqrt.f32 %v2215_v53 }
 0x6c9   : > { %3276 = vrsqrt.f32 %v2216_v52 }
 0x6cf   : > { %v2191_v39 = vpop.xlane.xlu1 %2190 }
 0x6d0   : > { %v2209_v55 = vmul.f32 0.03125, %v2191_v39 }
 0x6d2   : > { %v3275_v56 = vpop.eup %3274  ;;  %v2217_v58 = vadd.f32 1e-05, %v2209_v55 }
 0x6d3   : > { %v2194_v60 = vpop.xlane.xlu0 %2193  ;;  %v2231_v61 = vmul.f32 %v3275_v56, %v3941_v47  ;;  %v3277_v62 = vpop.eup %3276 }
 0x6d4   : > { %3278 = vrsqrt.f32 %v2217_v58  ;;  %v2210_v63 = vmul.f32 0.03125, %v2194_v60  ;;  %v2232_v1 = vmul.f32 %v3277_v62, %v3939_v46 }
 0x6d5   : > { %2919 = vmatmul.mubr.msk.f32.vlgmr.msra.gmra.mrb[22].mxu0 %vm551_vm0, %v2231_v61  ;;  %2927 = vmatmul.mubr.msk.f32.vlgmr.msra.gmra.mrb[26].mxu1 %vm551_vm0, %v2231_v61 }
 0x6d6   : > { %v2218_v0 = vadd.f32 1e-05, %v2210_v63  ;;  %2371 = vmatprep.mubr.f32.mxu0 %v3491_v57  ;;  %2484 = vmatprep.mubr.f32.mxu1 %v3491_v57 }
 0x6d8   : > { %3280 = vrsqrt.f32 %v2218_v0 }
 0x6d9   : > { %2920 = vmatmul.mubr.msk.f32.gmra.mrb[24].mxu0 %vm551_vm0, %v2232_v1  ;;  %2928 = vmatmul.mubr.msk.f32.gmra.mrb[28].mxu1 %vm551_vm0, %v2232_v1 }
 0x6da   : > { %2377 = vmatprep.mubr.f32.mxu0 %v3491_v57  ;;  %2490 = vmatprep.mubr.f32.mxu1 %v3491_v57 }
 0x6de   : > { %v3279_v47 = vpop.eup %3278 }
 0x6df   : > { %v2233_v2 = vmul.f32 %v3279_v47, %v3949_v54 }
 0x6e1   : > { %2921 = vmatmul.mubr.msk.f32.gmra.mrb[26].mxu0 %vm551_vm0, %v2233_v2  ;;  %2929 = vmatmul.mubr.msk.f32.gmra.mrb[30].mxu1 %vm551_vm0, %v2233_v2 }
 0x6e2   : > { %v3281_v4 = vpop.eup %3280  ;;  %2383 = vmatprep.mubr.f32.mxu0 %v3491_v57  ;;  %2496 = vmatprep.mubr.f32.mxu1 %v3491_v57 }
 0x6e3   : > { %v2234_v46 = vmul.f32 %v3281_v4, %v3953_v59 }
 0x6e5   : > { %2922 = vmatmul.mubr.msk.f32.gmra.mrb[28].mxu0 %vm551_vm0, %v2234_v46  ;;  %2930 = vmatmul.mubr.msk.f32.gmra.mrb[32].mxu1 %vm551_vm0, %v2234_v46 }
 0x6e6   : > { %2389 = vmatprep.mubr.f32.mxu0 %v3491_v57  ;;  %2502 = vmatprep.mubr.f32.mxu1 %v3491_v57 }
 0x6fc   : > { %v2200_v54 = vpop.xlane.xlu0 %2199 }
 0x6fd   : > { %v2212_v6 = vmul.f32 0.03125, %v2200_v54  ;;  %v2197_v9 = vpop.xlane.xlu1 %2196 }
 0x6fe   : > { %v2211_v10 = vmul.f32 0.03125, %v2197_v9 }
 0x6ff   : > { %v2220_v13 = vadd.f32 1e-05, %v2212_v6 }
 0x700   : > { %v2219_v14 = vadd.f32 1e-05, %v2211_v10 }
 0x702   : > { %3282 = vrsqrt.f32 %v2219_v14 }
 0x703   : > { %v2206_v15 = vpop.xlane.xlu0 %2205  ;;  %3284 = vrsqrt.f32 %v2220_v13 }
 0x704   : > { %v2214_v16 = vmul.f32 0.03125, %v2206_v15  ;;  %v2203_v17 = vpop.xlane.xlu1 %2202 }
 0x705   : > { %v2213_v59 = vmul.f32 0.03125, %v2203_v17 }
 0x706   : > { %v2222_v19 = vadd.f32 1e-05, %v2214_v16 }
 0x707   : > { %v2221_v18 = vadd.f32 1e-05, %v2213_v59 }
 0x709   : > { %3286 = vrsqrt.f32 %v2221_v18 }
 0x70a   : > { %3288 = vrsqrt.f32 %v2222_v19 }
 0x70c   : > { %v3283_v20 = vpop.eup %3282 }
 0x70d   : > { %v2235_v21 = vmul.f32 %v3283_v20, %v3963_v32  ;;  %v3285_v22 = vpop.eup %3284  ;;  %v4030_v32 = vrot.slane %v2255_v29, %v2267_v28 }
 0x70e   : > { %v2236_v23 = vmul.f32 %v3285_v22, %v3960_v31  ;;  %v4028_v31 = vrot.slane %v2255_v29, %v2259_v27 }
 0x70f   : > { %2923 = vmatmul.mubr.msk.f32.gmra.mrb[30].mxu0 %vm551_vm0, %v2235_v21  ;;  %2931 = vmatmul.mubr.msk.f32.gmra.mrb[34].mxu1 %vm551_vm0, %v2235_v21 }
 0x710   : > { %2395 = vmatprep.mubr.f32.mxu0 %v3491_v57  ;;  %2508 = vmatprep.mubr.f32.mxu1 %v3491_v57 }
 0x713   : > { %v3287_v24 = vpop.eup %3286  ;;  %2924 = vmatmul.mubr.msk.f32.gmra.mrb[32].mxu0 %vm551_vm0, %v2236_v23  ;;  %2932 = vmatmul.mubr.msk.f32.gmra.mrb[36].mxu1 %vm551_vm0, %v2236_v23 }
 0x714   : > { %2401 = vmatprep.mubr.f32.mxu0 %v3491_v57  ;;  %2514 = vmatprep.mubr.f32.mxu1 %v3491_v57  ;;  %v2237_v25 = vmul.f32 %v3287_v24, %v3975_v35  ;;  %v3289_v8 = vpop.eup %3288 }
 0x715   : > { %v2238_v26 = vmul.f32 %v3289_v8, %v3972_v33 }
 0x717   : > { %2925 = vmatmul.mubr.msk.f32.gmra.mrb[34].mxu0 %vm551_vm0, %v2237_v25  ;;  %2933 = vmatmul.mubr.msk.f32.gmra.mrb[38].mxu1 %vm551_vm0, %v2237_v25 }
 0x718   : > { %2407 = vmatprep.mubr.f32.mxu0 %v3491_v57  ;;  %2520 = vmatprep.mubr.f32.mxu1 %v3491_v57  ;;  %v2271_v57 = vsub.s32 3, %v3732_v5 }
 0x71a   : > { %v4037_v12 = vrot.slane %v2255_v29, %v2271_v57  ;;  %v4050_v39 = vrot.slane %v2559_v34, %v2271_v57 }
 0x71b   : > { %2926 = vmatmul.mubr.msk.f32.gmra.mrb[36].mxu0 %vm551_vm0, %v2238_v26  ;;  %2934 = vmatmul.mubr.msk.f32.gmra.mrb[40].mxu1 %vm551_vm0, %v2238_v26 }
 0x7a8   : > { %v2367_v37 = vpop.f32.mrb[22].mxu0  ;;  %v2480_v38 = vpop.f32.mrb[26].mxu1 }
 0x7a9   : > { %v2368_v40 = vadd.f32 %v2367_v37, %v4028_v31  ;;  %v2481_v42 = vadd.f32 %v2480_v38, %v4030_v32  ;;  %v2369_v33 = vpop.f32.mrb[23].mxu0  ;;  %v2482_v35 = vpop.f32.mrb[27].mxu1 }
 0x7aa   : > { %v2370_v43 = vadd.f32 %v2369_v33, %v4035_v36  ;;  %v2483_v45 = vadd.f32 %v2482_v35, %v4037_v12 }
 0x7ab   : > { %v2527_v48 = vmax.f32 %v2368_v40, 0.0  ;;  %v2529_v49 = vmax.f32 %v2481_v42, 0.0 }
 0x7ac   : > { %v2528_v51 = vmax.f32 %v2370_v43, 0.0  ;;  %v2373_v11 = vpop.f32.mrb[24].mxu0  ;;  %v2486_v52 = vpop.f32.mrb[28].mxu1  ;;  %v2530_v62 = vmax.f32 %v2483_v45, 0.0 }
 0x7ad   : > { %v2581_v53 = vmul.f32 %v4040_v41, %v2527_v48  ;;  %v2374_v55 = vadd.f32 %v2373_v11, %v4028_v31  ;;  %v2487_v56 = vadd.f32 %v2486_v52, %v4030_v32  ;;  %v2375_v58 = vpop.f32.mrb[25].mxu0  ;;  %v2488_v60 = vpop.f32.mrb[29].mxu1  ;;  %v2583_v47 = vmul.f32 %v4047_v50, %v2529_v49 }
 0x7ae   : > { %v2582_v61 = vmul.f32 %v4044_v44, %v2528_v51  ;;  %v2376_v63 = vadd.f32 %v2375_v58, %v4035_v36  ;;  %v2489_v0 = vadd.f32 %v2488_v60, %v4037_v12  ;;  %v2584_v6 = vmul.f32 %v4050_v39, %v2530_v62 }
 0x7af   : > { %v2531_v1 = vmax.f32 %v2374_v55, 0.0  ;;  %v2533_v4 = vmax.f32 %v2487_v56, 0.0 }
 0x7b0   : > { %v2613_v2 = vadd.f32 %v2582_v61, %v2581_v53  ;;  %v2532_v46 = vmax.f32 %v2376_v63, 0.0  ;;  %v2534_v10 = vmax.f32 %v2489_v0, 0.0 }
 0x7b1   : > { %v2585_v54 = vmul.f32 %v4040_v41, %v2531_v1  ;;  %v2587_v14 = vmul.f32 %v4047_v50, %v2533_v4 }
 0x7b2   : > { %v2586_v9 = vmul.f32 %v4044_v44, %v2532_v46  ;;  %v2614_v13 = vadd.f32 %v2613_v2, %v2583_v47  ;;  %v2588_v22 = vmul.f32 %v4050_v39, %v2534_v10 }
 0x7b4   : > { %v2618_v15 = vadd.f32 %v2586_v9, %v2585_v54  ;;  %v2379_v16 = vpop.f32.mrb[26].mxu0  ;;  %v2492_v17 = vpop.f32.mrb[30].mxu1  ;;  %v2615_v59 = vadd.f32 %v2614_v13, %v2584_v6 }
 0x7b5   : > { %v2380_v18 = vadd.f32 %v2379_v16, %v4028_v31  ;;  %v2493_v19 = vadd.f32 %v2492_v17, %v4030_v32  ;;  %v2381_v20 = vpop.f32.mrb[27].mxu0  ;;  %v2494_v21 = vpop.f32.mrb[31].mxu1 }
 0x7b6   : > { %v2382_v23 = vadd.f32 %v2381_v20, %v4035_v36  ;;  %v2495_v24 = vadd.f32 %v2494_v21, %v4037_v12  ;;  %2616 = vadd.xlane.f32.xlu1 %v2615_v59  ;;  %v2619_v25 = vadd.f32 %v2618_v15, %v2587_v14 }
 0x7b7   : > { %v2535_v8 = vmax.f32 %v2380_v18, 0.0  ;;  %v2537_v26 = vmax.f32 %v2493_v19, 0.0 }
 0x7b8   : > { %v2536_v7 = vmax.f32 %v2382_v23, 0.0  ;;  %v2385_v27 = vpop.f32.mrb[28].mxu0  ;;  %v2498_v28 = vpop.f32.mrb[32].mxu1  ;;  %v2620_v29 = vadd.f32 %v2619_v25, %v2588_v22  ;;  %v2538_v42 = vmax.f32 %v2495_v24, 0.0 }
 0x7b9   : > { %v2589_v30 = vmul.f32 %v4040_v41, %v2535_v8  ;;  %v2386_v57 = vadd.f32 %v2385_v27, %v4028_v31  ;;  %v2499_v34 = vadd.f32 %v2498_v28, %v4030_v32  ;;  %v2387_v37 = vpop.f32.mrb[29].mxu0  ;;  %v2500_v38 = vpop.f32.mrb[33].mxu1  ;;  %v2591_v45 = vmul.f32 %v4047_v50, %v2537_v26 }
 0x7ba   : > { %v2590_v40 = vmul.f32 %v4044_v44, %v2536_v7  ;;  %v2388_v33 = vadd.f32 %v2387_v37, %v4035_v36  ;;  %v2501_v35 = vadd.f32 %v2500_v38, %v4037_v12  ;;  %2621 = vadd.xlane.f32.xlu0 %v2620_v29  ;;  %v2592_v52 = vmul.f32 %v4050_v39, %v2538_v42 }
 0x7bb   : > { %v2539_v43 = vmax.f32 %v2386_v57, 0.0  ;;  %v2541_v49 = vmax.f32 %v2499_v34, 0.0 }
 0x7bc   : > { %v2623_v48 = vadd.f32 %v2590_v40, %v2589_v30  ;;  %v2540_v51 = vmax.f32 %v2388_v33, 0.0  ;;  %v2542_v55 = vmax.f32 %v2501_v35, 0.0 }
 0x7bd   : > { %v2593_v11 = vmul.f32 %v4040_v41, %v2539_v43  ;;  %v2595_v58 = vmul.f32 %v4047_v50, %v2541_v49 }
 0x7be   : > { %v2594_v53 = vmul.f32 %v4044_v44, %v2540_v51  ;;  %v2624_v56 = vadd.f32 %v2623_v48, %v2591_v45  ;;  %v2596_v62 = vmul.f32 %v4050_v39, %v2542_v55 }
 0x7c0   : > { %v2628_v60 = vadd.f32 %v2594_v53, %v2593_v11  ;;  %v2625_v61 = vadd.f32 %v2624_v56, %v2592_v52 }
 0x7c2   : > { %2626 = vadd.xlane.f32.xlu1 %v2625_v61  ;;  %v2629_v63 = vadd.f32 %v2628_v60, %v2595_v58 }
 0x7c4   : > { %v2630_v0 = vadd.f32 %v2629_v63, %v2596_v62 }
 0x7c6   : > { %2631 = vadd.xlane.f32.xlu0 %v2630_v0 }
 0x7e2   : > { %v2391_v1 = vpop.f32.mrb[30].mxu0  ;;  %v2504_v47 = vpop.f32.mrb[34].mxu1 }
 0x7e3   : > { %v2392_v2 = vadd.f32 %v2391_v1, %v4028_v31  ;;  %v2505_v4 = vadd.f32 %v2504_v47, %v4030_v32  ;;  %v2393_v46 = vpop.f32.mrb[31].mxu0  ;;  %v2506_v54 = vpop.f32.mrb[35].mxu1 }
 0x7e4   : > { %v2394_v6 = vadd.f32 %v2393_v46, %v4035_v36  ;;  %v2507_v14 = vadd.f32 %v2506_v54, %v4037_v12 }
 0x7e5   : > { %v2543_v9 = vmax.f32 %v2392_v2, 0.0  ;;  %v2545_v10 = vmax.f32 %v2505_v4, 0.0 }
 0x7e6   : > { %v2544_v13 = vmax.f32 %v2394_v6, 0.0  ;;  %v2397_v15 = vpop.f32.mrb[32].mxu0  ;;  %v2510_v16 = vpop.f32.mrb[36].mxu1  ;;  %v2546_v26 = vmax.f32 %v2507_v14, 0.0 }
 0x7e7   : > { %v2597_v17 = vmul.f32 %v4040_v41, %v2543_v9  ;;  %v2398_v59 = vadd.f32 %v2397_v15, %v4028_v31  ;;  %v2511_v18 = vadd.f32 %v2510_v16, %v4030_v32  ;;  %v2399_v19 = vpop.f32.mrb[33].mxu0  ;;  %v2512_v20 = vpop.f32.mrb[37].mxu1  ;;  %v2599_v25 = vmul.f32 %v4047_v50, %v2545_v10 }
 0x7e8   : > { %v2598_v21 = vmul.f32 %v4044_v44, %v2544_v13  ;;  %v2400_v22 = vadd.f32 %v2399_v19, %v4035_v36  ;;  %v2513_v24 = vadd.f32 %v2512_v20, %v4037_v12  ;;  %v2600_v48 = vmul.f32 %v4050_v39, %v2546_v26 }
 0x7e9   : > { %v2547_v23 = vmax.f32 %v2398_v59, 0.0  ;;  %v2549_v30 = vmax.f32 %v2511_v18, 0.0 }
 0x7ea   : > { %v2633_v8 = vadd.f32 %v2598_v21, %v2597_v17  ;;  %v2548_v7 = vmax.f32 %v2400_v22, 0.0  ;;  %v2403_v27 = vpop.f32.mrb[34].mxu0  ;;  %v2516_v28 = vpop.f32.mrb[38].mxu1  ;;  %v2550_v35 = vmax.f32 %v2513_v24, 0.0 }
 0x7eb   : > { %v2601_v29 = vmul.f32 %v4040_v41, %v2547_v23  ;;  %v2404_v57 = vadd.f32 %v2403_v27, %v4028_v31  ;;  %v2517_v34 = vadd.f32 %v2516_v28, %v4030_v32  ;;  %v2405_v37 = vpop.f32.mrb[35].mxu0  ;;  %v2518_v38 = vpop.f32.mrb[39].mxu1  ;;  %v2603_v55 = vmul.f32 %v4047_v50, %v2549_v30 }
 0x7ec   : > { %v2602_v40 = vmul.f32 %v4044_v44, %v2548_v7  ;;  %v2406_v42 = vadd.f32 %v2405_v37, %v4035_v36  ;;  %v2519_v33 = vadd.f32 %v2518_v38, %v4037_v12  ;;  %v2634_v45 = vadd.f32 %v2633_v8, %v2599_v25 }
 0x7ed   : > { %v2551_v43 = vmax.f32 %v2404_v57, 0.0  ;;  %v2553_v51 = vmax.f32 %v2517_v34, 0.0  ;;  %v2604_v2 = vmul.f32 %v4050_v39, %v2550_v35 }
 0x7ee   : > { %v2638_v49 = vadd.f32 %v2602_v40, %v2601_v29  ;;  %v2552_v11 = vmax.f32 %v2406_v42, 0.0  ;;  %v2409_v52 = vpop.f32.mrb[36].mxu0  ;;  %v2522_v53 = vpop.f32.mrb[40].mxu1  ;;  %v2554_v0 = vmax.f32 %v2519_v33, 0.0  ;;  %v2635_v46 = vadd.f32 %v2634_v45, %v2600_v48 }
 0x7ef   : > { %v2605_v56 = vmul.f32 %v4040_v41, %v2551_v43  ;;  %v2410_v58 = vadd.f32 %v2409_v52, %v4028_v31  ;;  %v2523_v60 = vadd.f32 %v2522_v53, %v4030_v32  ;;  %v2411_v61 = vpop.f32.mrb[37].mxu0  ;;  %v2524_v62 = vpop.f32.mrb[41].mxu1  ;;  %v2607_v6 = vmul.f32 %v4047_v50, %v2553_v51 }
 0x7f0   : > { %v2606_v63 = vmul.f32 %v4044_v44, %v2552_v11  ;;  %v2412_v1 = vadd.f32 %v2411_v61, %v4035_v36  ;;  %v2525_v47 = vadd.f32 %v2524_v62, %v4037_v12  ;;  %v2639_v54 = vadd.f32 %v2638_v49, %v2603_v55  ;;  %2636 = vadd.xlane.f32.xlu1 %v2635_v46 }
 0x7f1   : > { %v2555_v4 = vmax.f32 %v2410_v58, 0.0  ;;  %v2557_v31 = vmax.f32 %v2523_v60, 0.0  ;;  %v2608_v14 = vmul.f32 %v4050_v39, %v2554_v0 }
 0x7f2   : > { %v2643_v9 = vadd.f32 %v2606_v63, %v2605_v56  ;;  %v2556_v10 = vmax.f32 %v2412_v1, 0.0  ;;  %v2640_v13 = vadd.f32 %v2639_v54, %v2604_v2  ;;  %v2558_v15 = vmax.f32 %v2525_v47, 0.0 }
 0x7f3   : > { %v2609_v32 = vmul.f32 %v4040_v41, %v2555_v4  ;;  %v2611_v16 = vmul.f32 %v4047_v50, %v2557_v31  ;;  %v2935_v41 = vld [vmem:[#allocation2] ss:$0 sm:$0xff] }
 0x7f4   : > { %v2610_v36 = vmul.f32 %v4044_v44, %v2556_v10  ;;  %v2644_v12 = vadd.f32 %v2643_v9, %v2607_v6  ;;  %2641 = vadd.xlane.f32.xlu0 %v2640_v13  ;;  %v2612_v18 = vmul.f32 %v4050_v39, %v2558_v15  ;;  %v2720_v6 = vand.u32 127, %v409_v3 }
 0x7f6   : > { %v2648_v17 = vadd.f32 %v2610_v36, %v2609_v32  ;;  %v2645_v59 = vadd.f32 %v2644_v12, %v2608_v14  ;;  %v2723_v13 = vsub.s32 %v2720_v6, %v3732_v5 }
 0x7f8   : > { %2646 = vadd.xlane.f32.xlu1 %v2645_v59  ;;  %v2649_v19 = vadd.f32 %v2648_v17, %v2611_v16 }
 0x7fa   : > { %v2650_v20 = vadd.f32 %v2649_v19, %v2612_v18 }
 0x7fc   : > { %2651 = vadd.xlane.f32.xlu0 %v2650_v20 }
 0x809   : > { %2660 = vperm.xlu1 %3228, %v2935_v41  }
 0x843   : > { %v2617_v21 = vpop.xlane.xlu1 %2616 }
 0x847   : > { %v2622_v22 = vpop.xlane.xlu0 %2621 }
 0x84f   : > { %v2627_v23 = vpop.xlane.xlu1 %2626 }
 0x853   : > { %v2632_v24 = vpop.xlane.xlu0 %2631 }
 0x87d   : > { %v2637_v44 = vpop.xlane.xlu1 %2636 }
 0x881   : > { %v2642_v25 = vpop.xlane.xlu0 %2641 }
 0x885   : > { %v2647_v8 = vpop.xlane.xlu1 %2646 }
 0x889   : > { %v2661_v26 = vpop.permute.xlu1 %2660  ;;  %v2652_v7 = vpop.xlane.xlu0 %2651 }
 0x88a   : > { %v2663_v50 = vadd.f32 %v2661_v26, %v2617_v21  ;;  %v2664_v27 = vadd.f32 %v2661_v26, %v2622_v22  ;;  %v2665_v28 = vadd.f32 %v2661_v26, %v2627_v23  ;;  %v2666_v29 = vadd.f32 %v2661_v26, %v2632_v24 }
 0x88b   : > { %v2667_v39 = vadd.f32 %v2661_v26, %v2637_v44  ;;  %v2668_v30 = vadd.f32 %v2661_v26, %v2642_v25  ;;  %v2669_v57 = vadd.f32 %v2661_v26, %v2647_v8  ;;  %v2670_v34 = vadd.f32 %v2661_v26, %v2652_v7 }
 0x88c   : > { %v2671_v37 = vsub.f32 0.0, %v2663_v50  ;;  %v2672_v38 = vsub.f32 0.0, %v2664_v27  ;;  %v2673_v40 = vsub.f32 0.0, %v2665_v28  ;;  %v2674_v42 = vsub.f32 0.0, %v2666_v29 }
 0x88d   : > { %v2675_v33 = vsub.f32 0.0, %v2667_v39  ;;  %v2676_v35 = vsub.f32 0.0, %v2668_v30  ;;  %v2677_v43 = vsub.f32 0.0, %v2669_v57  ;;  %v2678_v11 = vsub.f32 0.0, %v2670_v34 }
 0x88e   : > { %v2679_v45 = vmul.f32 1.442695, %v2671_v37  ;;  %v2681_v48 = vmul.f32 1.442695, %v2672_v38  ;;  %v2683_v49 = vmul.f32 1.442695, %v2673_v40 }
 0x88f   : > { %v2685_v51 = vmul.f32 1.442695, %v2674_v42  ;;  %v2687_v52 = vmul.f32 1.442695, %v2675_v33  ;;  %v2689_v53 = vmul.f32 1.442695, %v2676_v35 }
 0x890   : > { %3290 = vpow2.f32 %v2679_v45  ;;  %v2691_v55 = vmul.f32 1.442695, %v2677_v43  ;;  %v2693_v56 = vmul.f32 1.442695, %v2678_v11 }
 0x891   : > { %3292 = vpow2.f32 %v2681_v48 }
 0x892   : > { %3294 = vpow2.f32 %v2683_v49 }
 0x893   : > { %3296 = vpow2.f32 %v2685_v51 }
 0x894   : > { %3298 = vpow2.f32 %v2687_v52 }
 0x895   : > { %3300 = vpow2.f32 %v2689_v53 }
 0x896   : > { %3302 = vpow2.f32 %v2691_v55 }
 0x897   : > { %3304 = vpow2.f32 %v2693_v56 }
 0x89a   : > { %v3291_v58 = vpop.eup %3290 }
 0x89b   : > { %v3293_v60 = vpop.eup %3292  ;;  %v2695_v61 = vadd.f32 1.0, %v3291_v58 }
 0x89c   : > { %v3295_v62 = vpop.eup %3294  ;;  %v2696_v63 = vadd.f32 1.0, %v3293_v60 }
 0x89d   : > { %v3297_v0 = vpop.eup %3296  ;;  %v2697_v1 = vadd.f32 1.0, %v3295_v62  ;;  %3306 = vrcp.f32 %v2695_v61 }
 0x89e   : > { %v3299_v47 = vpop.eup %3298  ;;  %v2698_v2 = vadd.f32 1.0, %v3297_v0  ;;  %3308 = vrcp.f32 %v2696_v63 }
 0x89f   : > { %v3301_v4 = vpop.eup %3300  ;;  %v2699_v46 = vadd.f32 1.0, %v3299_v47  ;;  %3310 = vrcp.f32 %v2697_v1 }
 0x8a0   : > { %v3303_v54 = vpop.eup %3302  ;;  %v2700_v9 = vadd.f32 1.0, %v3301_v4  ;;  %3312 = vrcp.f32 %v2698_v2 }
 0x8a1   : > { %v3305_v31 = vpop.eup %3304  ;;  %v2701_v10 = vadd.f32 1.0, %v3303_v54  ;;  %3314 = vrcp.f32 %v2699_v46 }
 0x8a2   : > { %3316 = vrcp.f32 %v2700_v9  ;;  %v2702_v32 = vadd.f32 1.0, %v3305_v31 }
 0x8a3   : > { %3318 = vrcp.f32 %v2701_v10 }
 0x8a4   : > { %3320 = vrcp.f32 %v2702_v32 }
 0x8a7   : > { %v3307_v14 = vpop.eup %3306 }
 0x8a8   : > { %v3309_v36 = vpop.eup %3308  ;;  %v2724_v15 = vrot.slane %v3307_v14, %v2723_v13 }
 0x8a9   : > { %v3311_v12 = vpop.eup %3310  ;;  %v2728_v16 = vrot.slane %v3309_v36, %v2723_v13 }
 0x8aa   : > { %v3313_v3 = vpop.eup %3312  ;;  %v2732_v17 = vrot.slane %v3311_v12, %v2723_v13 }
 0x8ab   : > { %v3315_v59 = vpop.eup %3314  ;;  %v2736_v18 = vrot.slane %v3313_v3, %v2723_v13  ;;  %v2754_v19 = vsel %vm2753_vm3, %v2728_v16, %v2724_v15 }
 0x8ac   : > { %v3317_v20 = vpop.eup %3316  ;;  %v2740_v41 = vrot.slane %v3315_v59, %v2723_v13  ;;  %v2756_v5 = vsel %vm2755_vm4, %v2732_v17, %v2754_v19 }
 0x8ad   : > { %v3319_v21 = vpop.eup %3318  ;;  %v2744_v22 = vrot.slane %v3317_v20, %v2723_v13  ;;  %v2758_v23 = vsel %vm2757_vm5, %v2736_v18, %v2756_v5 }
 0x8ae   : > { %v3321_v24 = vpop.eup %3320  ;;  %v2748_v44 = vrot.slane %v3319_v21, %v2723_v13  ;;  %v2760_v25 = vsel %vm2759_vm6, %v2740_v41, %v2758_v23 }
 0x8af   : > { %v2762_v8 = vsel %vm2761_vm7, %v2744_v22, %v2760_v25  ;;  %v2752_v26 = vrot.slane %v3321_v24, %v2723_v13 }
 0x8b0   : > { %v2764_v7 = vsel %vm2763_vm8, %v2748_v44, %v2762_v8 }
 0x8b1   : > { %v2766_v50 = vsel %vm2765_vm9, %v2752_v26, %v2764_v7 }
 0x8b2   : > { %2768 = vst.msk [vmem:[%s395_s15] sm:$0xff] %vm1297_vm2, %v2766_v50 }
 0x8b3 PF: > { %s4168_s14 = sld [smem:[#allocation13_spill]]  ;;  %s4169_s8 = sld [smem:[#allocation14_spill]] }
 0x8b4   : > { %s4170_s11 = smov %s3470_s12  ;;  %s4171_s12 = smov %s3474_s13 }
 0x8b9   : > { %p23_p7 = scmp.ge.s32.totalorder %s4168_s14, 4   ;;  %s4172_s13 = smov %s4169_s8 }
 0x8bb   :  { %25 = sbr.rel (!%p23_p7) target bundleno = 9 (0x9), region = 108 }
 0x8c2   :  { %2788 = vsyncpa [#allocation4], 1 }
 0x8c3   :  { %2790 = vsyncpa [#allocation4 + $0x1], 1 }
 0x8c4   :  { %2791 = vsyncpa [#allocation6], 1 }
 0x8c5   :  { %2792 = vsyncpa [#allocation9], 1 }

</bundles_post_ra>
